<compile_context>
chip_gen: v7x
topology: tpu7x:2x2x1
jax: 0.10.0
libtpu: 0.0.40
codegen_flags: <defaults>
</compile_context>

<pallas_src>
import functools

import jax
import jax.numpy as jnp
from jax.experimental import pallas as pl
from jax.experimental.pallas import tpu as pltpu


def _rnn_sender_kernel(max_len,
                       x_ref, wa_ref, ba_ref, sosb_ref, bout_ref,
                       wvh_ref, embwihb_ref,
                       out_ref, z_scr):
    f32 = jnp.float32
    bf16 = jnp.bfloat16
    B = x_ref.shape[0]
    H = sosb_ref.shape[1]
    V = bout_ref.shape[1]
    L = max_len + 1

    # agent(x): Linear(F -> H) gives the initial hidden state.
    # bf16 operands + f32 accumulation -> native single-pass bf16 MXU matmul.
    h = jnp.dot(x_ref[...].astype(bf16), wa_ref[...],
                preferred_element_type=f32) + ba_ref[...]

    # Loop-invariant broadcasts / weight loads hoisted (JAX never CSEs broadcasts).
    b_out = jnp.broadcast_to(bout_ref[...], (B, V))
    inp_proj = jnp.broadcast_to(sosb_ref[...], (B, H))   # sos@W_ih + b_ih + b_hh
    w_vh = wvh_ref[...]                                   # (H, V+H) bf16: [W_out | W_hh]
    emb_wih_b = embwihb_ref[...]                          # (V, H) f32: emb@W_ih + b_rec

    # Leaf rows for the per-step embedding select tree (loop-invariant).
    Vp = 1 if V <= 1 else (1 << (V - 1).bit_length())     # next power of two
    nbits = max(Vp.bit_length() - 1, 0)
    rows = [emb_wih_b[v:v + 1, :] for v in range(V)] + \
           [emb_wih_b[0:1, :]] * (Vp - V)                 # pads never selected (ids < V)

    # h0 @ W_hh for step 0 (one fused MXU pass; the logits part is unused here).
    hwhh = jnp.dot(h.astype(bf16), w_vh, preferred_element_type=f32)[:, V:]

    ids_cols = []
    for step in range(max_len):     # static unroll: max_len is small / compile-time
        # nn.RNNCell (tanh); both biases are pre-folded into inp_proj.
        h = jnp.tanh(inp_proj + hwhh)

        # Single MXU pass gives [logits | h@W_hh].  Logits sit at lane offset 0
        # (critical path); the W_hh slice has slack to absorb the lane offset.
        hz = jnp.dot(h.astype(bf16), w_vh, preferred_element_type=f32)
        z = hz[:, :V] + b_out            # (B, V) logits, f32
        hwhh = hz[:, V:]                 # (B, H), consumed next step

        # Eval-mode symbol: argmax(log_softmax(z)) == argmax(z).  Kept 2-D.
        ids = jnp.argmax(z, axis=1, keepdims=True).astype(jnp.int32)   # (B, 1)
        ids_cols.append(ids)

        # Stash logits; softmax/entropy stats are computed once after the loop.
        z_scr[step * B:(step + 1) * B, :] = z

        if step + 1 < max_len:
            # next inp_proj = embedding(ids) @ W_ih + b_rec, gathered with a
            # depth-log2(V) VPU select tree keyed on the bits of ids — no second
            # MXU push/pop on the per-step serial chain (V is tiny).
            level = rows
            for bit in range(nbits):
                sel = ((ids >> bit) & 1) == 1    # (B, 1) bool
                level = [jnp.where(sel, level[2 * i + 1], level[2 * i])
                         for i in range(len(level) // 2)]
            inp_proj = level[0]                   # (B, H)

    # Deferred, step-vectorized softmax stats: one pass over a (max_len*B, V) slab,
    # so EUP/VALU work never contends with the recurrence and vregs are filled.
    z_all = z_scr[...]
    z_max = jnp.max(z_all, axis=1, keepdims=True)
    es = jnp.exp(z_all - z_max)
    se = jnp.sum(es, axis=1, keepdims=True)
    log_se = jnp.log(se)
    lp_sel = -log_se                               # log_prob(argmax) = z_max - logsumexp
    logp_full = (z_all - z_max) - log_se           # full log-softmax (for entropy)
    p = es * pl.reciprocal(se, approx=True)        # EUP slot, off critical path
    ent = -jnp.sum(p * logp_full, axis=1, keepdims=True)

    # One lane-dense store: [seq | log_prob | entropy | zero-pad] as f32 columns;
    # trailing column of each section is the zero EOS slot.
    zero_col = jnp.zeros((B, 1), f32)
    seq_cols = [c.astype(f32) for c in ids_cols] + [zero_col]
    lp_cols = [lp_sel[s * B:(s + 1) * B, :] for s in range(max_len)] + [zero_col]
    ent_cols = [ent[s * B:(s + 1) * B, :] for s in range(max_len)] + [zero_col]
    pieces = seq_cols + lp_cols + ent_cols
    pad = out_ref.shape[1] - 3 * L
    if pad > 0:
        pieces.append(jnp.zeros((B, pad), f32))
    out_ref[...] = jnp.concatenate(pieces, axis=-1)


def rnn_sender_reinforce(x, params, max_len, batch_block=None):
    B, F = x.shape
    H = params["whh"].shape[0]
    V = params["wout"].shape[1]
    L = max_len + 1
    f32, bf16 = jnp.float32, jnp.bfloat16

    # Fold weights once outside the kernel (amortized over the whole recurrence):
    #   embedding lookup + input projection + RNN biases -> one (V, H) matrix,
    #   SOS projection + RNN biases                       -> one (1, H) row,
    #   hidden->vocab and hidden->hidden                  -> one (H, V+H) bf16 matrix
    #   ([W_out | W_hh] so logits start at lane 0).
    b_rec = params["bih"] + params["bhh"]                                  # (1, H)
    emb_wih_b = jnp.dot(params["emb"], params["wih"]) + b_rec              # (V, H)
    sos_proj_b = jnp.dot(params["sos"], params["wih"]) + b_rec             # (1, H)
    w_vh = jnp.concatenate([params["wout"], params["whh"]], axis=1).astype(bf16)
    wa = params["wa"].astype(bf16)

    # Single merged, lane-padded output slab: [seq | log_prob | entropy | zeros].
    slab_w = max(128, ((3 * L + 127) // 128) * 128)

    bb = B if batch_block is None else batch_block
    assert B % bb == 0, "batch_block must divide the batch size"
    grid = (B // bb,)

    def batch_spec(width):
        return pl.BlockSpec((bb, width), lambda b: (b, 0))

    def resident_spec(arr):
        return pl.BlockSpec(arr.shape, lambda b: (0, 0))

    weights = (wa, params["ba"], sos_proj_b, params["bout"], w_vh, emb_wih_b)

    slab = pl.pallas_call(
        functools.partial(_rnn_sender_kernel, max_len),
        out_shape=jax.ShapeDtypeStruct((B, slab_w), f32),
        grid=grid,
        in_specs=[batch_spec(F)] + [resident_spec(w) for w in weights],
        out_specs=batch_spec(slab_w),
        scratch_shapes=[pltpu.VMEM((max_len * bb, V), f32)],
        compiler_params=pltpu.CompilerParams(
            dimension_semantics=("parallel",)),
    )(x, *weights)

    seq = slab[:, :L].astype(jnp.int32)     # argmax ids are small ints: exact in f32
    logp = slab[:, L:2 * L]
    ent = slab[:, 2 * L:3 * L]
    return seq, logp, ent


def init_params(key, n_features, vocab_size, embed_dim, hidden_size):
    """Deterministic parameter init matching the PyTorch module's shapes/init style."""
    ks = jax.random.split(key, 9)

    def uniform(k, shape, bound):
        return jax.random.uniform(k, shape, jnp.float32, -bound, bound)

    ba_bound = 1.0 / jnp.sqrt(n_features)     # agent Linear fan_in
    rnn_bound = 1.0 / jnp.sqrt(hidden_size)   # RNNCell init bound
    out_bound = 1.0 / jnp.sqrt(hidden_size)   # hidden_to_output Linear fan_in

    params = {
        # agent: Linear(n_features, hidden_size), stored (F, H)
        "wa": uniform(ks[0], (n_features, hidden_size), ba_bound),
        "ba": uniform(ks[1], (1, hidden_size), ba_bound),
        # sos_embedding ~ N(0, 0.01)
        "sos": 0.01 * jax.random.normal(ks[2], (1, embed_dim), jnp.float32),
        # RNNCell(input=embed_dim, hidden=hidden_size), stored (E, H) / (H, H)
        "wih": uniform(ks[3], (embed_dim, hidden_size), rnn_bound),
        "bih": uniform(ks[4], (1, hidden_size), rnn_bound),
        "whh": uniform(ks[5], (hidden_size, hidden_size), rnn_bound),
        "bhh": uniform(ks[6], (1, hidden_size), rnn_bound),
        # hidden_to_output: Linear(hidden_size, vocab_size), stored (H, V)
        "wout": uniform(ks[7], (hidden_size, vocab_size), out_bound),
        "bout": uniform(ks[8], (1, vocab_size), out_bound),
        # Embedding(vocab_size, embed_dim) ~ N(0, 1)
        "emb": jax.random.normal(jax.random.fold_in(key, 123),
                                 (vocab_size, embed_dim), jnp.float32),
    }
    return params


if __name__ == "__main__":
    B, F = 8, 16            # batch, agent input features
    vocab_size = 16
    embed_dim = 16
    hidden_size = 32
    max_len = 8

    key = jax.random.PRNGKey(0)
    k_x, k_p = jax.random.split(key)
    x = jax.random.uniform(k_x, (B, F), jnp.float32, -0.1, 0.1)
    params = init_params(k_p, F, vocab_size, embed_dim, hidden_size)

    seq, logp, ent = rnn_sender_reinforce(x, params, max_len)
    jax.block_until_ready((seq, logp, ent))

    assert seq.shape == (B, max_len + 1) and seq.dtype == jnp.int32
    assert logp.shape == (B, max_len + 1) and ent.shape == (B, max_len + 1)
    assert bool(jnp.all(seq[:, -1] == 0))           # EOS column
    assert bool(jnp.all(ent[:, -1] == 0.0))         # EOS entropy is zero
    assert bool(jnp.all(ent[:, :-1] >= 0.0))        # entropies are non-negative
    assert bool(jnp.all(logp <= 0.0))               # log-probs are non-positive
    assert bool(jnp.all((seq >= 0) & (seq < vocab_size)))

    print("KERNEL_OK")
</pallas_src>

<mosaic_0001>
module attributes {stable_mosaic.version = 11 : i64} {
  func.func @_rnn_sender_kernel(%arg0: i32, %arg1: memref<8x16xf32, #tpu.memory_space<vmem>>, %arg2: memref<16x32xbf16, #tpu.memory_space<vmem>>, %arg3: memref<1x32xf32, #tpu.memory_space<vmem>>, %arg4: memref<1x32xf32, #tpu.memory_space<vmem>>, %arg5: memref<1x16xf32, #tpu.memory_space<vmem>>, %arg6: memref<32x48xbf16, #tpu.memory_space<vmem>>, %arg7: memref<16x32xf32, #tpu.memory_space<vmem>>, %arg8: memref<8x128xf32, #tpu.memory_space<vmem>>, %arg9: memref<64x16xf32, #tpu.memory_space<vmem>>) attributes {dimension_semantics = [#tpu.dimension_semantics<parallel>], iteration_bounds = array<i64: 1>, scalar_prefetch = 0 : i64, scratch_operands = 1 : i64, tpu.core_type = #tpu.core_type<tc>, window_params = [{transform_indices = @transform_0, window_bounds = array<i64: 8, 16>}, {pipeline_mode = #tpu.pipeline_mode<synchronous>, transform_indices = @transform_1, window_bounds = array<i64: 16, 32>}, {pipeline_mode = #tpu.pipeline_mode<synchronous>, transform_indices = @transform_2, window_bounds = array<i64: 1, 32>}, {pipeline_mode = #tpu.pipeline_mode<synchronous>, transform_indices = @transform_3, window_bounds = array<i64: 1, 32>}, {pipeline_mode = #tpu.pipeline_mode<synchronous>, transform_indices = @transform_4, window_bounds = array<i64: 1, 16>}, {pipeline_mode = #tpu.pipeline_mode<synchronous>, transform_indices = @transform_5, window_bounds = array<i64: 32, 48>}, {pipeline_mode = #tpu.pipeline_mode<synchronous>, transform_indices = @transform_6, window_bounds = array<i64: 16, 32>}, {transform_indices = @transform_7, window_bounds = array<i64: 8, 128>}]} {
    %c0 = arith.constant 0 : index
    %c0_0 = arith.constant 0 : index
    %0 = vector.load %arg1[%c0, %c0_0] : memref<8x16xf32, #tpu.memory_space<vmem>>, vector<8x16xf32>
    %1 = arith.truncf %0 : vector<8x16xf32> to vector<8x16xbf16>
    %c0_1 = arith.constant 0 : index
    %c0_2 = arith.constant 0 : index
    %2 = vector.load %arg2[%c0_1, %c0_2] : memref<16x32xbf16, #tpu.memory_space<vmem>>, vector<16x32xbf16>
    %cst = arith.constant dense<0.000000e+00> : vector<8x32xf32>
    %3 = tpu.matmul %1, %2, %cst {dimension_numbers = #tpu.dot_dimension_numbers<[1], [0], [0], [1], [0, 0, 1, 1], [], []>} : vector<8x16xbf16>, vector<16x32xbf16>, vector<8x32xf32> -> vector<8x32xf32>
    %c0_3 = arith.constant 0 : index
    %c0_4 = arith.constant 0 : index
    %4 = vector.load %arg3[%c0_3, %c0_4] : memref<1x32xf32, #tpu.memory_space<vmem>>, vector<1x32xf32>
    %5 = vector.broadcast %4 : vector<1x32xf32> to vector<8x32xf32>
    %6 = arith.addf %3, %5 : vector<8x32xf32>
    %c0_5 = arith.constant 0 : index
    %c0_6 = arith.constant 0 : index
    %7 = vector.load %arg5[%c0_5, %c0_6] : memref<1x16xf32, #tpu.memory_space<vmem>>, vector<1x16xf32>
    %8 = vector.shape_cast %7 : vector<1x16xf32> to vector<1x16xf32>
    %9 = vector.broadcast %8 : vector<1x16xf32> to vector<8x16xf32>
    %c0_7 = arith.constant 0 : index
    %c0_8 = arith.constant 0 : index
    %10 = vector.load %arg4[%c0_7, %c0_8] : memref<1x32xf32, #tpu.memory_space<vmem>>, vector<1x32xf32>
    %11 = vector.shape_cast %10 : vector<1x32xf32> to vector<1x32xf32>
    %12 = vector.broadcast %11 : vector<1x32xf32> to vector<8x32xf32>
    %c0_9 = arith.constant 0 : index
    %c0_10 = arith.constant 0 : index
    %13 = vector.load %arg6[%c0_9, %c0_10] : memref<32x48xbf16, #tpu.memory_space<vmem>>, vector<32x48xbf16>
    %c0_11 = arith.constant 0 : index
    %c0_12 = arith.constant 0 : index
    %14 = vector.load %arg7[%c0_11, %c0_12] : memref<16x32xf32, #tpu.memory_space<vmem>>, vector<16x32xf32>
    %15 = vector.extract_strided_slice %14 {offsets = [0, 0], sizes = [1, 32], strides = [1, 1]} : vector<16x32xf32> to vector<1x32xf32>
    %16 = vector.extract_strided_slice %14 {offsets = [1, 0], sizes = [1, 32], strides = [1, 1]} : vector<16x32xf32> to vector<1x32xf32>
    %17 = vector.extract_strided_slice %14 {offsets = [2, 0], sizes = [1, 32], strides = [1, 1]} : vector<16x32xf32> to vector<1x32xf32>
    %18 = vector.extract_strided_slice %14 {offsets = [3, 0], sizes = [1, 32], strides = [1, 1]} : vector<16x32xf32> to vector<1x32xf32>
    %19 = vector.extract_strided_slice %14 {offsets = [4, 0], sizes = [1, 32], strides = [1, 1]} : vector<16x32xf32> to vector<1x32xf32>
    %20 = vector.extract_strided_slice %14 {offsets = [5, 0], sizes = [1, 32], strides = [1, 1]} : vector<16x32xf32> to vector<1x32xf32>
    %21 = vector.extract_strided_slice %14 {offsets = [6, 0], sizes = [1, 32], strides = [1, 1]} : vector<16x32xf32> to vector<1x32xf32>
    %22 = vector.extract_strided_slice %14 {offsets = [7, 0], sizes = [1, 32], strides = [1, 1]} : vector<16x32xf32> to vector<1x32xf32>
    %23 = vector.extract_strided_slice %14 {offsets = [8, 0], sizes = [1, 32], strides = [1, 1]} : vector<16x32xf32> to vector<1x32xf32>
    %24 = vector.extract_strided_slice %14 {offsets = [9, 0], sizes = [1, 32], strides = [1, 1]} : vector<16x32xf32> to vector<1x32xf32>
    %25 = vector.extract_strided_slice %14 {offsets = [10, 0], sizes = [1, 32], strides = [1, 1]} : vector<16x32xf32> to vector<1x32xf32>
    %26 = vector.extract_strided_slice %14 {offsets = [11, 0], sizes = [1, 32], strides = [1, 1]} : vector<16x32xf32> to vector<1x32xf32>
    %27 = vector.extract_strided_slice %14 {offsets = [12, 0], sizes = [1, 32], strides = [1, 1]} : vector<16x32xf32> to vector<1x32xf32>
    %28 = vector.extract_strided_slice %14 {offsets = [13, 0], sizes = [1, 32], strides = [1, 1]} : vector<16x32xf32> to vector<1x32xf32>
    %29 = vector.extract_strided_slice %14 {offsets = [14, 0], sizes = [1, 32], strides = [1, 1]} : vector<16x32xf32> to vector<1x32xf32>
    %30 = vector.extract_strided_slice %14 {offsets = [15, 0], sizes = [1, 32], strides = [1, 1]} : vector<16x32xf32> to vector<1x32xf32>
    %31 = arith.truncf %6 : vector<8x32xf32> to vector<8x32xbf16>
    %cst_13 = arith.constant dense<0.000000e+00> : vector<8x48xf32>
    %32 = tpu.matmul %31, %13, %cst_13 {dimension_numbers = #tpu.dot_dimension_numbers<[1], [0], [0], [1], [0, 0, 1, 1], [], []>} : vector<8x32xbf16>, vector<32x48xbf16>, vector<8x48xf32> -> vector<8x48xf32>
    %33 = vector.extract_strided_slice %32 {offsets = [0, 16], sizes = [8, 32], strides = [1, 1]} : vector<8x48xf32> to vector<8x32xf32>
    %34 = arith.addf %12, %33 : vector<8x32xf32>
    %35 = math.tanh %34 : vector<8x32xf32>
    %36 = arith.truncf %35 : vector<8x32xf32> to vector<8x32xbf16>
    %cst_14 = arith.constant dense<0.000000e+00> : vector<8x48xf32>
    %37 = tpu.matmul %36, %13, %cst_14 {dimension_numbers = #tpu.dot_dimension_numbers<[1], [0], [0], [1], [0, 0, 1, 1], [], []>} : vector<8x32xbf16>, vector<32x48xbf16>, vector<8x48xf32> -> vector<8x48xf32>
    %38 = vector.extract_strided_slice %37 {offsets = [0, 0], sizes = [8, 16], strides = [1, 1]} : vector<8x48xf32> to vector<8x16xf32>
    %39 = arith.addf %38, %9 : vector<8x16xf32>
    %40 = vector.extract_strided_slice %37 {offsets = [0, 16], sizes = [8, 32], strides = [1, 1]} : vector<8x48xf32> to vector<8x32xf32>
    %41 = tpu.reduce_index %39 {axis = 1 : i32, kind = #tpu.reduction_kind<arg_max>} : vector<8x16xf32> -> vector<8xi32>
    %42 = vector.shape_cast %41 : vector<8xi32> to vector<8x1xi32>
    %c0_15 = arith.constant 0 : index
    %c0_16 = arith.constant 0 : index
    %43 = vector.load %arg9[%c0_15, %c0_16] : memref<64x16xf32, #tpu.memory_space<vmem>>, vector<8x16xf32>
    tpu.vector_store %arg9[%c0_15, %c0_16], %39 {strides = array<i32>} : memref<64x16xf32, #tpu.memory_space<vmem>>, vector<8x16xf32>,
    %c0_i32 = arith.constant 0 : i32
    %44 = vector.broadcast %c0_i32 : i32 to vector<8x1xi32>
    %45 = arith.shrsi %42, %44 : vector<8x1xi32>
    %c1_i32 = arith.constant 1 : i32
    %46 = vector.broadcast %c1_i32 : i32 to vector<8x1xi32>
    %47 = arith.andi %45, %46 : vector<8x1xi32>
    %c1_i32_17 = arith.constant 1 : i32
    %48 = vector.broadcast %c1_i32_17 : i32 to vector<8x1xi32>
    %49 = arith.cmpi eq, %47, %48 : vector<8x1xi32>
    %50 = vector.shape_cast %49 : vector<8x1xi1> to vector<8x1xi1>
    %51 = vector.broadcast %50 : vector<8x1xi1> to vector<8x32xi1>
    %52 = vector.shape_cast %16 : vector<1x32xf32> to vector<1x32xf32>
    %53 = vector.broadcast %52 : vector<1x32xf32> to vector<8x32xf32>
    %54 = vector.shape_cast %15 : vector<1x32xf32> to vector<1x32xf32>
    %55 = vector.broadcast %54 : vector<1x32xf32> to vector<8x32xf32>
    %56 = arith.select %51, %53, %55 : vector<8x32xi1>, vector<8x32xf32>
    %57 = vector.shape_cast %49 : vector<8x1xi1> to vector<8x1xi1>
    %58 = vector.broadcast %57 : vector<8x1xi1> to vector<8x32xi1>
    %59 = vector.shape_cast %18 : vector<1x32xf32> to vector<1x32xf32>
    %60 = vector.broadcast %59 : vector<1x32xf32> to vector<8x32xf32>
    %61 = vector.shape_cast %17 : vector<1x32xf32> to vector<1x32xf32>
    %62 = vector.broadcast %61 : vector<1x32xf32> to vector<8x32xf32>
    %63 = arith.select %58, %60, %62 : vector<8x32xi1>, vector<8x32xf32>
    %64 = vector.shape_cast %49 : vector<8x1xi1> to vector<8x1xi1>
    %65 = vector.broadcast %64 : vector<8x1xi1> to vector<8x32xi1>
    %66 = vector.shape_cast %20 : vector<1x32xf32> to vector<1x32xf32>
    %67 = vector.broadcast %66 : vector<1x32xf32> to vector<8x32xf32>
    %68 = vector.shape_cast %19 : vector<1x32xf32> to vector<1x32xf32>
    %69 = vector.broadcast %68 : vector<1x32xf32> to vector<8x32xf32>
    %70 = arith.select %65, %67, %69 : vector<8x32xi1>, vector<8x32xf32>
    %71 = vector.shape_cast %49 : vector<8x1xi1> to vector<8x1xi1>
    %72 = vector.broadcast %71 : vector<8x1xi1> to vector<8x32xi1>
    %73 = vector.shape_cast %22 : vector<1x32xf32> to vector<1x32xf32>
    %74 = vector.broadcast %73 : vector<1x32xf32> to vector<8x32xf32>
    %75 = vector.shape_cast %21 : vector<1x32xf32> to vector<1x32xf32>
    %76 = vector.broadcast %75 : vector<1x32xf32> to vector<8x32xf32>
    %77 = arith.select %72, %74, %76 : vector<8x32xi1>, vector<8x32xf32>
    %78 = vector.shape_cast %49 : vector<8x1xi1> to vector<8x1xi1>
    %79 = vector.broadcast %78 : vector<8x1xi1> to vector<8x32xi1>
    %80 = vector.shape_cast %24 : vector<1x32xf32> to vector<1x32xf32>
    %81 = vector.broadcast %80 : vector<1x32xf32> to vector<8x32xf32>
    %82 = vector.shape_cast %23 : vector<1x32xf32> to vector<1x32xf32>
    %83 = vector.broadcast %82 : vector<1x32xf32> to vector<8x32xf32>
    %84 = arith.select %79, %81, %83 : vector<8x32xi1>, vector<8x32xf32>
    %85 = vector.shape_cast %49 : vector<8x1xi1> to vector<8x1xi1>
    %86 = vector.broadcast %85 : vector<8x1xi1> to vector<8x32xi1>
    %87 = vector.shape_cast %26 : vector<1x32xf32> to vector<1x32xf32>
    %88 = vector.broadcast %87 : vector<1x32xf32> to vector<8x32xf32>
    %89 = vector.shape_cast %25 : vector<1x32xf32> to vector<1x32xf32>
    %90 = vector.broadcast %89 : vector<1x32xf32> to vector<8x32xf32>
    %91 = arith.select %86, %88, %90 : vector<8x32xi1>, vector<8x32xf32>
    %92 = vector.shape_cast %49 : vector<8x1xi1> to vector<8x1xi1>
    %93 = vector.broadcast %92 : vector<8x1xi1> to vector<8x32xi1>
    %94 = vector.shape_cast %28 : vector<1x32xf32> to vector<1x32xf32>
    %95 = vector.broadcast %94 : vector<1x32xf32> to vector<8x32xf32>
    %96 = vector.shape_cast %27 : vector<1x32xf32> to vector<1x32xf32>
    %97 = vector.broadcast %96 : vector<1x32xf32> to vector<8x32xf32>
    %98 = arith.select %93, %95, %97 : vector<8x32xi1>, vector<8x32xf32>
    %99 = vector.shape_cast %49 : vector<8x1xi1> to vector<8x1xi1>
    %100 = vector.broadcast %99 : vector<8x1xi1> to vector<8x32xi1>
    %101 = vector.shape_cast %30 : vector<1x32xf32> to vector<1x32xf32>
    %102 = vector.broadcast %101 : vector<1x32xf32> to vector<8x32xf32>
    %103 = vector.shape_cast %29 : vector<1x32xf32> to vector<1x32xf32>
    %104 = vector.broadcast %103 : vector<1x32xf32> to vector<8x32xf32>
    %105 = arith.select %100, %102, %104 : vector<8x32xi1>, vector<8x32xf32>
    %c1_i32_18 = arith.constant 1 : i32
    %106 = vector.broadcast %c1_i32_18 : i32 to vector<8x1xi32>
    %107 = arith.shrsi %42, %106 : vector<8x1xi32>
    %c1_i32_19 = arith.constant 1 : i32
    %108 = vector.broadcast %c1_i32_19 : i32 to vector<8x1xi32>
    %109 = arith.andi %107, %108 : vector<8x1xi32>
    %c1_i32_20 = arith.constant 1 : i32
    %110 = vector.broadcast %c1_i32_20 : i32 to vector<8x1xi32>
    %111 = arith.cmpi eq, %109, %110 : vector<8x1xi32>
    %112 = vector.shape_cast %111 : vector<8x1xi1> to vector<8x1xi1>
    %113 = vector.broadcast %112 : vector<8x1xi1> to vector<8x32xi1>
    %114 = arith.select %113, %63, %56 : vector<8x32xi1>, vector<8x32xf32>
    %115 = vector.shape_cast %111 : vector<8x1xi1> to vector<8x1xi1>
    %116 = vector.broadcast %115 : vector<8x1xi1> to vector<8x32xi1>
    %117 = arith.select %116, %77, %70 : vector<8x32xi1>, vector<8x32xf32>
    %118 = vector.shape_cast %111 : vector<8x1xi1> to vector<8x1xi1>
    %119 = vector.broadcast %118 : vector<8x1xi1> to vector<8x32xi1>
    %120 = arith.select %119, %91, %84 : vector<8x32xi1>, vector<8x32xf32>
    %121 = vector.shape_cast %111 : vector<8x1xi1> to vector<8x1xi1>
    %122 = vector.broadcast %121 : vector<8x1xi1> to vector<8x32xi1>
    %123 = arith.select %122, %105, %98 : vector<8x32xi1>, vector<8x32xf32>
    %c2_i32 = arith.constant 2 : i32
    %124 = vector.broadcast %c2_i32 : i32 to vector<8x1xi32>
    %125 = arith.shrsi %42, %124 : vector<8x1xi32>
    %c1_i32_21 = arith.constant 1 : i32
    %126 = vector.broadcast %c1_i32_21 : i32 to vector<8x1xi32>
    %127 = arith.andi %125, %126 : vector<8x1xi32>
    %c1_i32_22 = arith.constant 1 : i32
    %128 = vector.broadcast %c1_i32_22 : i32 to vector<8x1xi32>
    %129 = arith.cmpi eq, %127, %128 : vector<8x1xi32>
    %130 = vector.shape_cast %129 : vector<8x1xi1> to vector<8x1xi1>
    %131 = vector.broadcast %130 : vector<8x1xi1> to vector<8x32xi1>
    %132 = arith.select %131, %117, %114 : vector<8x32xi1>, vector<8x32xf32>
    %133 = vector.shape_cast %129 : vector<8x1xi1> to vector<8x1xi1>
    %134 = vector.broadcast %133 : vector<8x1xi1> to vector<8x32xi1>
    %135 = arith.select %134, %123, %120 : vector<8x32xi1>, vector<8x32xf32>
    %c3_i32 = arith.constant 3 : i32
    %136 = vector.broadcast %c3_i32 : i32 to vector<8x1xi32>
    %137 = arith.shrsi %42, %136 : vector<8x1xi32>
    %c1_i32_23 = arith.constant 1 : i32
    %138 = vector.broadcast %c1_i32_23 : i32 to vector<8x1xi32>
    %139 = arith.andi %137, %138 : vector<8x1xi32>
    %c1_i32_24 = arith.constant 1 : i32
    %140 = vector.broadcast %c1_i32_24 : i32 to vector<8x1xi32>
    %141 = arith.cmpi eq, %139, %140 : vector<8x1xi32>
    %142 = vector.shape_cast %141 : vector<8x1xi1> to vector<8x1xi1>
    %143 = vector.broadcast %142 : vector<8x1xi1> to vector<8x32xi1>
    %144 = arith.select %143, %135, %132 : vector<8x32xi1>, vector<8x32xf32>
    %145 = arith.addf %144, %40 : vector<8x32xf32>
    %146 = math.tanh %145 : vector<8x32xf32>
    %147 = arith.truncf %146 : vector<8x32xf32> to vector<8x32xbf16>
    %cst_25 = arith.constant dense<0.000000e+00> : vector<8x48xf32>
    %148 = tpu.matmul %147, %13, %cst_25 {dimension_numbers = #tpu.dot_dimension_numbers<[1], [0], [0], [1], [0, 0, 1, 1], [], []>} : vector<8x32xbf16>, vector<32x48xbf16>, vector<8x48xf32> -> vector<8x48xf32>
    %149 = vector.extract_strided_slice %148 {offsets = [0, 0], sizes = [8, 16], strides = [1, 1]} : vector<8x48xf32> to vector<8x16xf32>
    %150 = arith.addf %149, %9 : vector<8x16xf32>
    %151 = vector.extract_strided_slice %148 {offsets = [0, 16], sizes = [8, 32], strides = [1, 1]} : vector<8x48xf32> to vector<8x32xf32>
    %152 = tpu.reduce_index %150 {axis = 1 : i32, kind = #tpu.reduction_kind<arg_max>} : vector<8x16xf32> -> vector<8xi32>
    %153 = vector.shape_cast %152 : vector<8xi32> to vector<8x1xi32>
    %c8 = arith.constant 8 : index
    %c0_26 = arith.constant 0 : index
    %154 = vector.load %arg9[%c8, %c0_26] : memref<64x16xf32, #tpu.memory_space<vmem>>, vector<8x16xf32>
    tpu.vector_store %arg9[%c8, %c0_26], %150 {strides = array<i32>} : memref<64x16xf32, #tpu.memory_space<vmem>>, vector<8x16xf32>,
    %c0_i32_27 = arith.constant 0 : i32
    %155 = vector.broadcast %c0_i32_27 : i32 to vector<8x1xi32>
    %156 = arith.shrsi %153, %155 : vector<8x1xi32>
    %c1_i32_28 = arith.constant 1 : i32
    %157 = vector.broadcast %c1_i32_28 : i32 to vector<8x1xi32>
    %158 = arith.andi %156, %157 : vector<8x1xi32>
    %c1_i32_29 = arith.constant 1 : i32
    %159 = vector.broadcast %c1_i32_29 : i32 to vector<8x1xi32>
    %160 = arith.cmpi eq, %158, %159 : vector<8x1xi32>
    %161 = vector.shape_cast %160 : vector<8x1xi1> to vector<8x1xi1>
    %162 = vector.broadcast %161 : vector<8x1xi1> to vector<8x32xi1>
    %163 = vector.shape_cast %16 : vector<1x32xf32> to vector<1x32xf32>
    %164 = vector.broadcast %163 : vector<1x32xf32> to vector<8x32xf32>
    %165 = vector.shape_cast %15 : vector<1x32xf32> to vector<1x32xf32>
    %166 = vector.broadcast %165 : vector<1x32xf32> to vector<8x32xf32>
    %167 = arith.select %162, %164, %166 : vector<8x32xi1>, vector<8x32xf32>
    %168 = vector.shape_cast %160 : vector<8x1xi1> to vector<8x1xi1>
    %169 = vector.broadcast %168 : vector<8x1xi1> to vector<8x32xi1>
    %170 = vector.shape_cast %18 : vector<1x32xf32> to vector<1x32xf32>
    %171 = vector.broadcast %170 : vector<1x32xf32> to vector<8x32xf32>
    %172 = vector.shape_cast %17 : vector<1x32xf32> to vector<1x32xf32>
    %173 = vector.broadcast %172 : vector<1x32xf32> to vector<8x32xf32>
    %174 = arith.select %169, %171, %173 : vector<8x32xi1>, vector<8x32xf32>
    %175 = vector.shape_cast %160 : vector<8x1xi1> to vector<8x1xi1>
    %176 = vector.broadcast %175 : vector<8x1xi1> to vector<8x32xi1>
    %177 = vector.shape_cast %20 : vector<1x32xf32> to vector<1x32xf32>
    %178 = vector.broadcast %177 : vector<1x32xf32> to vector<8x32xf32>
    %179 = vector.shape_cast %19 : vector<1x32xf32> to vector<1x32xf32>
    %180 = vector.broadcast %179 : vector<1x32xf32> to vector<8x32xf32>
    %181 = arith.select %176, %178, %180 : vector<8x32xi1>, vector<8x32xf32>
    %182 = vector.shape_cast %160 : vector<8x1xi1> to vector<8x1xi1>
    %183 = vector.broadcast %182 : vector<8x1xi1> to vector<8x32xi1>
    %184 = vector.shape_cast %22 : vector<1x32xf32> to vector<1x32xf32>
    %185 = vector.broadcast %184 : vector<1x32xf32> to vector<8x32xf32>
    %186 = vector.shape_cast %21 : vector<1x32xf32> to vector<1x32xf32>
    %187 = vector.broadcast %186 : vector<1x32xf32> to vector<8x32xf32>
    %188 = arith.select %183, %185, %187 : vector<8x32xi1>, vector<8x32xf32>
    %189 = vector.shape_cast %160 : vector<8x1xi1> to vector<8x1xi1>
    %190 = vector.broadcast %189 : vector<8x1xi1> to vector<8x32xi1>
    %191 = vector.shape_cast %24 : vector<1x32xf32> to vector<1x32xf32>
    %192 = vector.broadcast %191 : vector<1x32xf32> to vector<8x32xf32>
    %193 = vector.shape_cast %23 : vector<1x32xf32> to vector<1x32xf32>
    %194 = vector.broadcast %193 : vector<1x32xf32> to vector<8x32xf32>
    %195 = arith.select %190, %192, %194 : vector<8x32xi1>, vector<8x32xf32>
    %196 = vector.shape_cast %160 : vector<8x1xi1> to vector<8x1xi1>
    %197 = vector.broadcast %196 : vector<8x1xi1> to vector<8x32xi1>
    %198 = vector.shape_cast %26 : vector<1x32xf32> to vector<1x32xf32>
    %199 = vector.broadcast %198 : vector<1x32xf32> to vector<8x32xf32>
    %200 = vector.shape_cast %25 : vector<1x32xf32> to vector<1x32xf32>
    %201 = vector.broadcast %200 : vector<1x32xf32> to vector<8x32xf32>
    %202 = arith.select %197, %199, %201 : vector<8x32xi1>, vector<8x32xf32>
    %203 = vector.shape_cast %160 : vector<8x1xi1> to vector<8x1xi1>
    %204 = vector.broadcast %203 : vector<8x1xi1> to vector<8x32xi1>
    %205 = vector.shape_cast %28 : vector<1x32xf32> to vector<1x32xf32>
    %206 = vector.broadcast %205 : vector<1x32xf32> to vector<8x32xf32>
    %207 = vector.shape_cast %27 : vector<1x32xf32> to vector<1x32xf32>
    %208 = vector.broadcast %207 : vector<1x32xf32> to vector<8x32xf32>
    %209 = arith.select %204, %206, %208 : vector<8x32xi1>, vector<8x32xf32>
    %210 = vector.shape_cast %160 : vector<8x1xi1> to vector<8x1xi1>
    %211 = vector.broadcast %210 : vector<8x1xi1> to vector<8x32xi1>
    %212 = vector.shape_cast %30 : vector<1x32xf32> to vector<1x32xf32>
    %213 = vector.broadcast %212 : vector<1x32xf32> to vector<8x32xf32>
    %214 = vector.shape_cast %29 : vector<1x32xf32> to vector<1x32xf32>
    %215 = vector.broadcast %214 : vector<1x32xf32> to vector<8x32xf32>
    %216 = arith.select %211, %213, %215 : vector<8x32xi1>, vector<8x32xf32>
    %c1_i32_30 = arith.constant 1 : i32
    %217 = vector.broadcast %c1_i32_30 : i32 to vector<8x1xi32>
    %218 = arith.shrsi %153, %217 : vector<8x1xi32>
    %c1_i32_31 = arith.constant 1 : i32
    %219 = vector.broadcast %c1_i32_31 : i32 to vector<8x1xi32>
    %220 = arith.andi %218, %219 : vector<8x1xi32>
    %c1_i32_32 = arith.constant 1 : i32
    %221 = vector.broadcast %c1_i32_32 : i32 to vector<8x1xi32>
    %222 = arith.cmpi eq, %220, %221 : vector<8x1xi32>
    %223 = vector.shape_cast %222 : vector<8x1xi1> to vector<8x1xi1>
    %224 = vector.broadcast %223 : vector<8x1xi1> to vector<8x32xi1>
    %225 = arith.select %224, %174, %167 : vector<8x32xi1>, vector<8x32xf32>
    %226 = vector.shape_cast %222 : vector<8x1xi1> to vector<8x1xi1>
    %227 = vector.broadcast %226 : vector<8x1xi1> to vector<8x32xi1>
    %228 = arith.select %227, %188, %181 : vector<8x32xi1>, vector<8x32xf32>
    %229 = vector.shape_cast %222 : vector<8x1xi1> to vector<8x1xi1>
    %230 = vector.broadcast %229 : vector<8x1xi1> to vector<8x32xi1>
    %231 = arith.select %230, %202, %195 : vector<8x32xi1>, vector<8x32xf32>
    %232 = vector.shape_cast %222 : vector<8x1xi1> to vector<8x1xi1>
    %233 = vector.broadcast %232 : vector<8x1xi1> to vector<8x32xi1>
    %234 = arith.select %233, %216, %209 : vector<8x32xi1>, vector<8x32xf32>
    %c2_i32_33 = arith.constant 2 : i32
    %235 = vector.broadcast %c2_i32_33 : i32 to vector<8x1xi32>
    %236 = arith.shrsi %153, %235 : vector<8x1xi32>
    %c1_i32_34 = arith.constant 1 : i32
    %237 = vector.broadcast %c1_i32_34 : i32 to vector<8x1xi32>
    %238 = arith.andi %236, %237 : vector<8x1xi32>
    %c1_i32_35 = arith.constant 1 : i32
    %239 = vector.broadcast %c1_i32_35 : i32 to vector<8x1xi32>
    %240 = arith.cmpi eq, %238, %239 : vector<8x1xi32>
    %241 = vector.shape_cast %240 : vector<8x1xi1> to vector<8x1xi1>
    %242 = vector.broadcast %241 : vector<8x1xi1> to vector<8x32xi1>
    %243 = arith.select %242, %228, %225 : vector<8x32xi1>, vector<8x32xf32>
    %244 = vector.shape_cast %240 : vector<8x1xi1> to vector<8x1xi1>
    %245 = vector.broadcast %244 : vector<8x1xi1> to vector<8x32xi1>
    %246 = arith.select %245, %234, %231 : vector<8x32xi1>, vector<8x32xf32>
    %c3_i32_36 = arith.constant 3 : i32
    %247 = vector.broadcast %c3_i32_36 : i32 to vector<8x1xi32>
    %248 = arith.shrsi %153, %247 : vector<8x1xi32>
    %c1_i32_37 = arith.constant 1 : i32
    %249 = vector.broadcast %c1_i32_37 : i32 to vector<8x1xi32>
    %250 = arith.andi %248, %249 : vector<8x1xi32>
    %c1_i32_38 = arith.constant 1 : i32
    %251 = vector.broadcast %c1_i32_38 : i32 to vector<8x1xi32>
    %252 = arith.cmpi eq, %250, %251 : vector<8x1xi32>
    %253 = vector.shape_cast %252 : vector<8x1xi1> to vector<8x1xi1>
    %254 = vector.broadcast %253 : vector<8x1xi1> to vector<8x32xi1>
    %255 = arith.select %254, %246, %243 : vector<8x32xi1>, vector<8x32xf32>
    %256 = arith.addf %255, %151 : vector<8x32xf32>
    %257 = math.tanh %256 : vector<8x32xf32>
    %258 = arith.truncf %257 : vector<8x32xf32> to vector<8x32xbf16>
    %cst_39 = arith.constant dense<0.000000e+00> : vector<8x48xf32>
    %259 = tpu.matmul %258, %13, %cst_39 {dimension_numbers = #tpu.dot_dimension_numbers<[1], [0], [0], [1], [0, 0, 1, 1], [], []>} : vector<8x32xbf16>, vector<32x48xbf16>, vector<8x48xf32> -> vector<8x48xf32>
    %260 = vector.extract_strided_slice %259 {offsets = [0, 0], sizes = [8, 16], strides = [1, 1]} : vector<8x48xf32> to vector<8x16xf32>
    %261 = arith.addf %260, %9 : vector<8x16xf32>
    %262 = vector.extract_strided_slice %259 {offsets = [0, 16], sizes = [8, 32], strides = [1, 1]} : vector<8x48xf32> to vector<8x32xf32>
    %263 = tpu.reduce_index %261 {axis = 1 : i32, kind = #tpu.reduction_kind<arg_max>} : vector<8x16xf32> -> vector<8xi32>
    %264 = vector.shape_cast %263 : vector<8xi32> to vector<8x1xi32>
    %c16 = arith.constant 16 : index
    %c0_40 = arith.constant 0 : index
    %265 = vector.load %arg9[%c16, %c0_40] : memref<64x16xf32, #tpu.memory_space<vmem>>, vector<8x16xf32>
    tpu.vector_store %arg9[%c16, %c0_40], %261 {strides = array<i32>} : memref<64x16xf32, #tpu.memory_space<vmem>>, vector<8x16xf32>,
    %c0_i32_41 = arith.constant 0 : i32
    %266 = vector.broadcast %c0_i32_41 : i32 to vector<8x1xi32>
    %267 = arith.shrsi %264, %266 : vector<8x1xi32>
    %c1_i32_42 = arith.constant 1 : i32
    %268 = vector.broadcast %c1_i32_42 : i32 to vector<8x1xi32>
    %269 = arith.andi %267, %268 : vector<8x1xi32>
    %c1_i32_43 = arith.constant 1 : i32
    %270 = vector.broadcast %c1_i32_43 : i32 to vector<8x1xi32>
    %271 = arith.cmpi eq, %269, %270 : vector<8x1xi32>
    %272 = vector.shape_cast %271 : vector<8x1xi1> to vector<8x1xi1>
    %273 = vector.broadcast %272 : vector<8x1xi1> to vector<8x32xi1>
    %274 = vector.shape_cast %16 : vector<1x32xf32> to vector<1x32xf32>
    %275 = vector.broadcast %274 : vector<1x32xf32> to vector<8x32xf32>
    %276 = vector.shape_cast %15 : vector<1x32xf32> to vector<1x32xf32>
    %277 = vector.broadcast %276 : vector<1x32xf32> to vector<8x32xf32>
    %278 = arith.select %273, %275, %277 : vector<8x32xi1>, vector<8x32xf32>
    %279 = vector.shape_cast %271 : vector<8x1xi1> to vector<8x1xi1>
    %280 = vector.broadcast %279 : vector<8x1xi1> to vector<8x32xi1>
    %281 = vector.shape_cast %18 : vector<1x32xf32> to vector<1x32xf32>
    %282 = vector.broadcast %281 : vector<1x32xf32> to vector<8x32xf32>
    %283 = vector.shape_cast %17 : vector<1x32xf32> to vector<1x32xf32>
    %284 = vector.broadcast %283 : vector<1x32xf32> to vector<8x32xf32>
    %285 = arith.select %280, %282, %284 : vector<8x32xi1>, vector<8x32xf32>
    %286 = vector.shape_cast %271 : vector<8x1xi1> to vector<8x1xi1>
    %287 = vector.broadcast %286 : vector<8x1xi1> to vector<8x32xi1>
    %288 = vector.shape_cast %20 : vector<1x32xf32> to vector<1x32xf32>
    %289 = vector.broadcast %288 : vector<1x32xf32> to vector<8x32xf32>
    %290 = vector.shape_cast %19 : vector<1x32xf32> to vector<1x32xf32>
    %291 = vector.broadcast %290 : vector<1x32xf32> to vector<8x32xf32>
    %292 = arith.select %287, %289, %291 : vector<8x32xi1>, vector<8x32xf32>
    %293 = vector.shape_cast %271 : vector<8x1xi1> to vector<8x1xi1>
    %294 = vector.broadcast %293 : vector<8x1xi1> to vector<8x32xi1>
    %295 = vector.shape_cast %22 : vector<1x32xf32> to vector<1x32xf32>
    %296 = vector.broadcast %295 : vector<1x32xf32> to vector<8x32xf32>
    %297 = vector.shape_cast %21 : vector<1x32xf32> to vector<1x32xf32>
    %298 = vector.broadcast %297 : vector<1x32xf32> to vector<8x32xf32>
    %299 = arith.select %294, %296, %298 : vector<8x32xi1>, vector<8x32xf32>
    %300 = vector.shape_cast %271 : vector<8x1xi1> to vector<8x1xi1>
    %301 = vector.broadcast %300 : vector<8x1xi1> to vector<8x32xi1>
    %302 = vector.shape_cast %24 : vector<1x32xf32> to vector<1x32xf32>
    %303 = vector.broadcast %302 : vector<1x32xf32> to vector<8x32xf32>
    %304 = vector.shape_cast %23 : vector<1x32xf32> to vector<1x32xf32>
    %305 = vector.broadcast %304 : vector<1x32xf32> to vector<8x32xf32>
    %306 = arith.select %301, %303, %305 : vector<8x32xi1>, vector<8x32xf32>
    %307 = vector.shape_cast %271 : vector<8x1xi1> to vector<8x1xi1>
    %308 = vector.broadcast %307 : vector<8x1xi1> to vector<8x32xi1>
    %309 = vector.shape_cast %26 : vector<1x32xf32> to vector<1x32xf32>
    %310 = vector.broadcast %309 : vector<1x32xf32> to vector<8x32xf32>
    %311 = vector.shape_cast %25 : vector<1x32xf32> to vector<1x32xf32>
    %312 = vector.broadcast %311 : vector<1x32xf32> to vector<8x32xf32>
    %313 = arith.select %308, %310, %312 : vector<8x32xi1>, vector<8x32xf32>
    %314 = vector.shape_cast %271 : vector<8x1xi1> to vector<8x1xi1>
    %315 = vector.broadcast %314 : vector<8x1xi1> to vector<8x32xi1>
    %316 = vector.shape_cast %28 : vector<1x32xf32> to vector<1x32xf32>
    %317 = vector.broadcast %316 : vector<1x32xf32> to vector<8x32xf32>
    %318 = vector.shape_cast %27 : vector<1x32xf32> to vector<1x32xf32>
    %319 = vector.broadcast %318 : vector<1x32xf32> to vector<8x32xf32>
    %320 = arith.select %315, %317, %319 : vector<8x32xi1>, vector<8x32xf32>
    %321 = vector.shape_cast %271 : vector<8x1xi1> to vector<8x1xi1>
    %322 = vector.broadcast %321 : vector<8x1xi1> to vector<8x32xi1>
    %323 = vector.shape_cast %30 : vector<1x32xf32> to vector<1x32xf32>
    %324 = vector.broadcast %323 : vector<1x32xf32> to vector<8x32xf32>
    %325 = vector.shape_cast %29 : vector<1x32xf32> to vector<1x32xf32>
    %326 = vector.broadcast %325 : vector<1x32xf32> to vector<8x32xf32>
    %327 = arith.select %322, %324, %326 : vector<8x32xi1>, vector<8x32xf32>
    %c1_i32_44 = arith.constant 1 : i32
    %328 = vector.broadcast %c1_i32_44 : i32 to vector<8x1xi32>
    %329 = arith.shrsi %264, %328 : vector<8x1xi32>
    %c1_i32_45 = arith.constant 1 : i32
    %330 = vector.broadcast %c1_i32_45 : i32 to vector<8x1xi32>
    %331 = arith.andi %329, %330 : vector<8x1xi32>
    %c1_i32_46 = arith.constant 1 : i32
    %332 = vector.broadcast %c1_i32_46 : i32 to vector<8x1xi32>
    %333 = arith.cmpi eq, %331, %332 : vector<8x1xi32>
    %334 = vector.shape_cast %333 : vector<8x1xi1> to vector<8x1xi1>
    %335 = vector.broadcast %334 : vector<8x1xi1> to vector<8x32xi1>
    %336 = arith.select %335, %285, %278 : vector<8x32xi1>, vector<8x32xf32>
    %337 = vector.shape_cast %333 : vector<8x1xi1> to vector<8x1xi1>
    %338 = vector.broadcast %337 : vector<8x1xi1> to vector<8x32xi1>
    %339 = arith.select %338, %299, %292 : vector<8x32xi1>, vector<8x32xf32>
    %340 = vector.shape_cast %333 : vector<8x1xi1> to vector<8x1xi1>
    %341 = vector.broadcast %340 : vector<8x1xi1> to vector<8x32xi1>
    %342 = arith.select %341, %313, %306 : vector<8x32xi1>, vector<8x32xf32>
    %343 = vector.shape_cast %333 : vector<8x1xi1> to vector<8x1xi1>
    %344 = vector.broadcast %343 : vector<8x1xi1> to vector<8x32xi1>
    %345 = arith.select %344, %327, %320 : vector<8x32xi1>, vector<8x32xf32>
    %c2_i32_47 = arith.constant 2 : i32
    %346 = vector.broadcast %c2_i32_47 : i32 to vector<8x1xi32>
    %347 = arith.shrsi %264, %346 : vector<8x1xi32>
    %c1_i32_48 = arith.constant 1 : i32
    %348 = vector.broadcast %c1_i32_48 : i32 to vector<8x1xi32>
    %349 = arith.andi %347, %348 : vector<8x1xi32>
    %c1_i32_49 = arith.constant 1 : i32
    %350 = vector.broadcast %c1_i32_49 : i32 to vector<8x1xi32>
    %351 = arith.cmpi eq, %349, %350 : vector<8x1xi32>
    %352 = vector.shape_cast %351 : vector<8x1xi1> to vector<8x1xi1>
    %353 = vector.broadcast %352 : vector<8x1xi1> to vector<8x32xi1>
    %354 = arith.select %353, %339, %336 : vector<8x32xi1>, vector<8x32xf32>
    %355 = vector.shape_cast %351 : vector<8x1xi1> to vector<8x1xi1>
    %356 = vector.broadcast %355 : vector<8x1xi1> to vector<8x32xi1>
    %357 = arith.select %356, %345, %342 : vector<8x32xi1>, vector<8x32xf32>
    %c3_i32_50 = arith.constant 3 : i32
    %358 = vector.broadcast %c3_i32_50 : i32 to vector<8x1xi32>
    %359 = arith.shrsi %264, %358 : vector<8x1xi32>
    %c1_i32_51 = arith.constant 1 : i32
    %360 = vector.broadcast %c1_i32_51 : i32 to vector<8x1xi32>
    %361 = arith.andi %359, %360 : vector<8x1xi32>
    %c1_i32_52 = arith.constant 1 : i32
    %362 = vector.broadcast %c1_i32_52 : i32 to vector<8x1xi32>
    %363 = arith.cmpi eq, %361, %362 : vector<8x1xi32>
    %364 = vector.shape_cast %363 : vector<8x1xi1> to vector<8x1xi1>
    %365 = vector.broadcast %364 : vector<8x1xi1> to vector<8x32xi1>
    %366 = arith.select %365, %357, %354 : vector<8x32xi1>, vector<8x32xf32>
    %367 = arith.addf %366, %262 : vector<8x32xf32>
    %368 = math.tanh %367 : vector<8x32xf32>
    %369 = arith.truncf %368 : vector<8x32xf32> to vector<8x32xbf16>
    %cst_53 = arith.constant dense<0.000000e+00> : vector<8x48xf32>
    %370 = tpu.matmul %369, %13, %cst_53 {dimension_numbers = #tpu.dot_dimension_numbers<[1], [0], [0], [1], [0, 0, 1, 1], [], []>} : vector<8x32xbf16>, vector<32x48xbf16>, vector<8x48xf32> -> vector<8x48xf32>
    %371 = vector.extract_strided_slice %370 {offsets = [0, 0], sizes = [8, 16], strides = [1, 1]} : vector<8x48xf32> to vector<8x16xf32>
    %372 = arith.addf %371, %9 : vector<8x16xf32>
    %373 = vector.extract_strided_slice %370 {offsets = [0, 16], sizes = [8, 32], strides = [1, 1]} : vector<8x48xf32> to vector<8x32xf32>
    %374 = tpu.reduce_index %372 {axis = 1 : i32, kind = #tpu.reduction_kind<arg_max>} : vector<8x16xf32> -> vector<8xi32>
    %375 = vector.shape_cast %374 : vector<8xi32> to vector<8x1xi32>
    %c24 = arith.constant 24 : index
    %c0_54 = arith.constant 0 : index
    %376 = vector.load %arg9[%c24, %c0_54] : memref<64x16xf32, #tpu.memory_space<vmem>>, vector<8x16xf32>
    tpu.vector_store %arg9[%c24, %c0_54], %372 {strides = array<i32>} : memref<64x16xf32, #tpu.memory_space<vmem>>, vector<8x16xf32>,
    %c0_i32_55 = arith.constant 0 : i32
    %377 = vector.broadcast %c0_i32_55 : i32 to vector<8x1xi32>
    %378 = arith.shrsi %375, %377 : vector<8x1xi32>
    %c1_i32_56 = arith.constant 1 : i32
    %379 = vector.broadcast %c1_i32_56 : i32 to vector<8x1xi32>
    %380 = arith.andi %378, %379 : vector<8x1xi32>
    %c1_i32_57 = arith.constant 1 : i32
    %381 = vector.broadcast %c1_i32_57 : i32 to vector<8x1xi32>
    %382 = arith.cmpi eq, %380, %381 : vector<8x1xi32>
    %383 = vector.shape_cast %382 : vector<8x1xi1> to vector<8x1xi1>
    %384 = vector.broadcast %383 : vector<8x1xi1> to vector<8x32xi1>
    %385 = vector.shape_cast %16 : vector<1x32xf32> to vector<1x32xf32>
    %386 = vector.broadcast %385 : vector<1x32xf32> to vector<8x32xf32>
    %387 = vector.shape_cast %15 : vector<1x32xf32> to vector<1x32xf32>
    %388 = vector.broadcast %387 : vector<1x32xf32> to vector<8x32xf32>
    %389 = arith.select %384, %386, %388 : vector<8x32xi1>, vector<8x32xf32>
    %390 = vector.shape_cast %382 : vector<8x1xi1> to vector<8x1xi1>
    %391 = vector.broadcast %390 : vector<8x1xi1> to vector<8x32xi1>
    %392 = vector.shape_cast %18 : vector<1x32xf32> to vector<1x32xf32>
    %393 = vector.broadcast %392 : vector<1x32xf32> to vector<8x32xf32>
    %394 = vector.shape_cast %17 : vector<1x32xf32> to vector<1x32xf32>
    %395 = vector.broadcast %394 : vector<1x32xf32> to vector<8x32xf32>
    %396 = arith.select %391, %393, %395 : vector<8x32xi1>, vector<8x32xf32>
    %397 = vector.shape_cast %382 : vector<8x1xi1> to vector<8x1xi1>
    %398 = vector.broadcast %397 : vector<8x1xi1> to vector<8x32xi1>
    %399 = vector.shape_cast %20 : vector<1x32xf32> to vector<1x32xf32>
    %400 = vector.broadcast %399 : vector<1x32xf32> to vector<8x32xf32>
    %401 = vector.shape_cast %19 : vector<1x32xf32> to vector<1x32xf32>
    %402 = vector.broadcast %401 : vector<1x32xf32> to vector<8x32xf32>
    %403 = arith.select %398, %400, %402 : vector<8x32xi1>, vector<8x32xf32>
    %404 = vector.shape_cast %382 : vector<8x1xi1> to vector<8x1xi1>
    %405 = vector.broadcast %404 : vector<8x1xi1> to vector<8x32xi1>
    %406 = vector.shape_cast %22 : vector<1x32xf32> to vector<1x32xf32>
    %407 = vector.broadcast %406 : vector<1x32xf32> to vector<8x32xf32>
    %408 = vector.shape_cast %21 : vector<1x32xf32> to vector<1x32xf32>
    %409 = vector.broadcast %408 : vector<1x32xf32> to vector<8x32xf32>
    %410 = arith.select %405, %407, %409 : vector<8x32xi1>, vector<8x32xf32>
    %411 = vector.shape_cast %382 : vector<8x1xi1> to vector<8x1xi1>
    %412 = vector.broadcast %411 : vector<8x1xi1> to vector<8x32xi1>
    %413 = vector.shape_cast %24 : vector<1x32xf32> to vector<1x32xf32>
    %414 = vector.broadcast %413 : vector<1x32xf32> to vector<8x32xf32>
    %415 = vector.shape_cast %23 : vector<1x32xf32> to vector<1x32xf32>
    %416 = vector.broadcast %415 : vector<1x32xf32> to vector<8x32xf32>
    %417 = arith.select %412, %414, %416 : vector<8x32xi1>, vector<8x32xf32>
    %418 = vector.shape_cast %382 : vector<8x1xi1> to vector<8x1xi1>
    %419 = vector.broadcast %418 : vector<8x1xi1> to vector<8x32xi1>
    %420 = vector.shape_cast %26 : vector<1x32xf32> to vector<1x32xf32>
    %421 = vector.broadcast %420 : vector<1x32xf32> to vector<8x32xf32>
    %422 = vector.shape_cast %25 : vector<1x32xf32> to vector<1x32xf32>
    %423 = vector.broadcast %422 : vector<1x32xf32> to vector<8x32xf32>
    %424 = arith.select %419, %421, %423 : vector<8x32xi1>, vector<8x32xf32>
    %425 = vector.shape_cast %382 : vector<8x1xi1> to vector<8x1xi1>
    %426 = vector.broadcast %425 : vector<8x1xi1> to vector<8x32xi1>
    %427 = vector.shape_cast %28 : vector<1x32xf32> to vector<1x32xf32>
    %428 = vector.broadcast %427 : vector<1x32xf32> to vector<8x32xf32>
    %429 = vector.shape_cast %27 : vector<1x32xf32> to vector<1x32xf32>
    %430 = vector.broadcast %429 : vector<1x32xf32> to vector<8x32xf32>
    %431 = arith.select %426, %428, %430 : vector<8x32xi1>, vector<8x32xf32>
    %432 = vector.shape_cast %382 : vector<8x1xi1> to vector<8x1xi1>
    %433 = vector.broadcast %432 : vector<8x1xi1> to vector<8x32xi1>
    %434 = vector.shape_cast %30 : vector<1x32xf32> to vector<1x32xf32>
    %435 = vector.broadcast %434 : vector<1x32xf32> to vector<8x32xf32>
    %436 = vector.shape_cast %29 : vector<1x32xf32> to vector<1x32xf32>
    %437 = vector.broadcast %436 : vector<1x32xf32> to vector<8x32xf32>
    %438 = arith.select %433, %435, %437 : vector<8x32xi1>, vector<8x32xf32>
    %c1_i32_58 = arith.constant 1 : i32
    %439 = vector.broadcast %c1_i32_58 : i32 to vector<8x1xi32>
    %440 = arith.shrsi %375, %439 : vector<8x1xi32>
    %c1_i32_59 = arith.constant 1 : i32
    %441 = vector.broadcast %c1_i32_59 : i32 to vector<8x1xi32>
    %442 = arith.andi %440, %441 : vector<8x1xi32>
    %c1_i32_60 = arith.constant 1 : i32
    %443 = vector.broadcast %c1_i32_60 : i32 to vector<8x1xi32>
    %444 = arith.cmpi eq, %442, %443 : vector<8x1xi32>
    %445 = vector.shape_cast %444 : vector<8x1xi1> to vector<8x1xi1>
    %446 = vector.broadcast %445 : vector<8x1xi1> to vector<8x32xi1>
    %447 = arith.select %446, %396, %389 : vector<8x32xi1>, vector<8x32xf32>
    %448 = vector.shape_cast %444 : vector<8x1xi1> to vector<8x1xi1>
    %449 = vector.broadcast %448 : vector<8x1xi1> to vector<8x32xi1>
    %450 = arith.select %449, %410, %403 : vector<8x32xi1>, vector<8x32xf32>
    %451 = vector.shape_cast %444 : vector<8x1xi1> to vector<8x1xi1>
    %452 = vector.broadcast %451 : vector<8x1xi1> to vector<8x32xi1>
    %453 = arith.select %452, %424, %417 : vector<8x32xi1>, vector<8x32xf32>
    %454 = vector.shape_cast %444 : vector<8x1xi1> to vector<8x1xi1>
    %455 = vector.broadcast %454 : vector<8x1xi1> to vector<8x32xi1>
    %456 = arith.select %455, %438, %431 : vector<8x32xi1>, vector<8x32xf32>
    %c2_i32_61 = arith.constant 2 : i32
    %457 = vector.broadcast %c2_i32_61 : i32 to vector<8x1xi32>
    %458 = arith.shrsi %375, %457 : vector<8x1xi32>
    %c1_i32_62 = arith.constant 1 : i32
    %459 = vector.broadcast %c1_i32_62 : i32 to vector<8x1xi32>
    %460 = arith.andi %458, %459 : vector<8x1xi32>
    %c1_i32_63 = arith.constant 1 : i32
    %461 = vector.broadcast %c1_i32_63 : i32 to vector<8x1xi32>
    %462 = arith.cmpi eq, %460, %461 : vector<8x1xi32>
    %463 = vector.shape_cast %462 : vector<8x1xi1> to vector<8x1xi1>
    %464 = vector.broadcast %463 : vector<8x1xi1> to vector<8x32xi1>
    %465 = arith.select %464, %450, %447 : vector<8x32xi1>, vector<8x32xf32>
    %466 = vector.shape_cast %462 : vector<8x1xi1> to vector<8x1xi1>
    %467 = vector.broadcast %466 : vector<8x1xi1> to vector<8x32xi1>
    %468 = arith.select %467, %456, %453 : vector<8x32xi1>, vector<8x32xf32>
    %c3_i32_64 = arith.constant 3 : i32
    %469 = vector.broadcast %c3_i32_64 : i32 to vector<8x1xi32>
    %470 = arith.shrsi %375, %469 : vector<8x1xi32>
    %c1_i32_65 = arith.constant 1 : i32
    %471 = vector.broadcast %c1_i32_65 : i32 to vector<8x1xi32>
    %472 = arith.andi %470, %471 : vector<8x1xi32>
    %c1_i32_66 = arith.constant 1 : i32
    %473 = vector.broadcast %c1_i32_66 : i32 to vector<8x1xi32>
    %474 = arith.cmpi eq, %472, %473 : vector<8x1xi32>
    %475 = vector.shape_cast %474 : vector<8x1xi1> to vector<8x1xi1>
    %476 = vector.broadcast %475 : vector<8x1xi1> to vector<8x32xi1>
    %477 = arith.select %476, %468, %465 : vector<8x32xi1>, vector<8x32xf32>
    %478 = arith.addf %477, %373 : vector<8x32xf32>
    %479 = math.tanh %478 : vector<8x32xf32>
    %480 = arith.truncf %479 : vector<8x32xf32> to vector<8x32xbf16>
    %cst_67 = arith.constant dense<0.000000e+00> : vector<8x48xf32>
    %481 = tpu.matmul %480, %13, %cst_67 {dimension_numbers = #tpu.dot_dimension_numbers<[1], [0], [0], [1], [0, 0, 1, 1], [], []>} : vector<8x32xbf16>, vector<32x48xbf16>, vector<8x48xf32> -> vector<8x48xf32>
    %482 = vector.extract_strided_slice %481 {offsets = [0, 0], sizes = [8, 16], strides = [1, 1]} : vector<8x48xf32> to vector<8x16xf32>
    %483 = arith.addf %482, %9 : vector<8x16xf32>
    %484 = vector.extract_strided_slice %481 {offsets = [0, 16], sizes = [8, 32], strides = [1, 1]} : vector<8x48xf32> to vector<8x32xf32>
    %485 = tpu.reduce_index %483 {axis = 1 : i32, kind = #tpu.reduction_kind<arg_max>} : vector<8x16xf32> -> vector<8xi32>
    %486 = vector.shape_cast %485 : vector<8xi32> to vector<8x1xi32>
    %c32 = arith.constant 32 : index
    %c0_68 = arith.constant 0 : index
    %487 = vector.load %arg9[%c32, %c0_68] : memref<64x16xf32, #tpu.memory_space<vmem>>, vector<8x16xf32>
    tpu.vector_store %arg9[%c32, %c0_68], %483 {strides = array<i32>} : memref<64x16xf32, #tpu.memory_space<vmem>>, vector<8x16xf32>,
    %c0_i32_69 = arith.constant 0 : i32
    %488 = vector.broadcast %c0_i32_69 : i32 to vector<8x1xi32>
    %489 = arith.shrsi %486, %488 : vector<8x1xi32>
    %c1_i32_70 = arith.constant 1 : i32
    %490 = vector.broadcast %c1_i32_70 : i32 to vector<8x1xi32>
    %491 = arith.andi %489, %490 : vector<8x1xi32>
    %c1_i32_71 = arith.constant 1 : i32
    %492 = vector.broadcast %c1_i32_71 : i32 to vector<8x1xi32>
    %493 = arith.cmpi eq, %491, %492 : vector<8x1xi32>
    %494 = vector.shape_cast %493 : vector<8x1xi1> to vector<8x1xi1>
    %495 = vector.broadcast %494 : vector<8x1xi1> to vector<8x32xi1>
    %496 = vector.shape_cast %16 : vector<1x32xf32> to vector<1x32xf32>
    %497 = vector.broadcast %496 : vector<1x32xf32> to vector<8x32xf32>
    %498 = vector.shape_cast %15 : vector<1x32xf32> to vector<1x32xf32>
    %499 = vector.broadcast %498 : vector<1x32xf32> to vector<8x32xf32>
    %500 = arith.select %495, %497, %499 : vector<8x32xi1>, vector<8x32xf32>
    %501 = vector.shape_cast %493 : vector<8x1xi1> to vector<8x1xi1>
    %502 = vector.broadcast %501 : vector<8x1xi1> to vector<8x32xi1>
    %503 = vector.shape_cast %18 : vector<1x32xf32> to vector<1x32xf32>
    %504 = vector.broadcast %503 : vector<1x32xf32> to vector<8x32xf32>
    %505 = vector.shape_cast %17 : vector<1x32xf32> to vector<1x32xf32>
    %506 = vector.broadcast %505 : vector<1x32xf32> to vector<8x32xf32>
    %507 = arith.select %502, %504, %506 : vector<8x32xi1>, vector<8x32xf32>
    %508 = vector.shape_cast %493 : vector<8x1xi1> to vector<8x1xi1>
    %509 = vector.broadcast %508 : vector<8x1xi1> to vector<8x32xi1>
    %510 = vector.shape_cast %20 : vector<1x32xf32> to vector<1x32xf32>
    %511 = vector.broadcast %510 : vector<1x32xf32> to vector<8x32xf32>
    %512 = vector.shape_cast %19 : vector<1x32xf32> to vector<1x32xf32>
    %513 = vector.broadcast %512 : vector<1x32xf32> to vector<8x32xf32>
    %514 = arith.select %509, %511, %513 : vector<8x32xi1>, vector<8x32xf32>
    %515 = vector.shape_cast %493 : vector<8x1xi1> to vector<8x1xi1>
    %516 = vector.broadcast %515 : vector<8x1xi1> to vector<8x32xi1>
    %517 = vector.shape_cast %22 : vector<1x32xf32> to vector<1x32xf32>
    %518 = vector.broadcast %517 : vector<1x32xf32> to vector<8x32xf32>
    %519 = vector.shape_cast %21 : vector<1x32xf32> to vector<1x32xf32>
    %520 = vector.broadcast %519 : vector<1x32xf32> to vector<8x32xf32>
    %521 = arith.select %516, %518, %520 : vector<8x32xi1>, vector<8x32xf32>
    %522 = vector.shape_cast %493 : vector<8x1xi1> to vector<8x1xi1>
    %523 = vector.broadcast %522 : vector<8x1xi1> to vector<8x32xi1>
    %524 = vector.shape_cast %24 : vector<1x32xf32> to vector<1x32xf32>
    %525 = vector.broadcast %524 : vector<1x32xf32> to vector<8x32xf32>
    %526 = vector.shape_cast %23 : vector<1x32xf32> to vector<1x32xf32>
    %527 = vector.broadcast %526 : vector<1x32xf32> to vector<8x32xf32>
    %528 = arith.select %523, %525, %527 : vector<8x32xi1>, vector<8x32xf32>
    %529 = vector.shape_cast %493 : vector<8x1xi1> to vector<8x1xi1>
    %530 = vector.broadcast %529 : vector<8x1xi1> to vector<8x32xi1>
    %531 = vector.shape_cast %26 : vector<1x32xf32> to vector<1x32xf32>
    %532 = vector.broadcast %531 : vector<1x32xf32> to vector<8x32xf32>
    %533 = vector.shape_cast %25 : vector<1x32xf32> to vector<1x32xf32>
    %534 = vector.broadcast %533 : vector<1x32xf32> to vector<8x32xf32>
    %535 = arith.select %530, %532, %534 : vector<8x32xi1>, vector<8x32xf32>
    %536 = vector.shape_cast %493 : vector<8x1xi1> to vector<8x1xi1>
    %537 = vector.broadcast %536 : vector<8x1xi1> to vector<8x32xi1>
    %538 = vector.shape_cast %28 : vector<1x32xf32> to vector<1x32xf32>
    %539 = vector.broadcast %538 : vector<1x32xf32> to vector<8x32xf32>
    %540 = vector.shape_cast %27 : vector<1x32xf32> to vector<1x32xf32>
    %541 = vector.broadcast %540 : vector<1x32xf32> to vector<8x32xf32>
    %542 = arith.select %537, %539, %541 : vector<8x32xi1>, vector<8x32xf32>
    %543 = vector.shape_cast %493 : vector<8x1xi1> to vector<8x1xi1>
    %544 = vector.broadcast %543 : vector<8x1xi1> to vector<8x32xi1>
    %545 = vector.shape_cast %30 : vector<1x32xf32> to vector<1x32xf32>
    %546 = vector.broadcast %545 : vector<1x32xf32> to vector<8x32xf32>
    %547 = vector.shape_cast %29 : vector<1x32xf32> to vector<1x32xf32>
    %548 = vector.broadcast %547 : vector<1x32xf32> to vector<8x32xf32>
    %549 = arith.select %544, %546, %548 : vector<8x32xi1>, vector<8x32xf32>
    %c1_i32_72 = arith.constant 1 : i32
    %550 = vector.broadcast %c1_i32_72 : i32 to vector<8x1xi32>
    %551 = arith.shrsi %486, %550 : vector<8x1xi32>
    %c1_i32_73 = arith.constant 1 : i32
    %552 = vector.broadcast %c1_i32_73 : i32 to vector<8x1xi32>
    %553 = arith.andi %551, %552 : vector<8x1xi32>
    %c1_i32_74 = arith.constant 1 : i32
    %554 = vector.broadcast %c1_i32_74 : i32 to vector<8x1xi32>
    %555 = arith.cmpi eq, %553, %554 : vector<8x1xi32>
    %556 = vector.shape_cast %555 : vector<8x1xi1> to vector<8x1xi1>
    %557 = vector.broadcast %556 : vector<8x1xi1> to vector<8x32xi1>
    %558 = arith.select %557, %507, %500 : vector<8x32xi1>, vector<8x32xf32>
    %559 = vector.shape_cast %555 : vector<8x1xi1> to vector<8x1xi1>
    %560 = vector.broadcast %559 : vector<8x1xi1> to vector<8x32xi1>
    %561 = arith.select %560, %521, %514 : vector<8x32xi1>, vector<8x32xf32>
    %562 = vector.shape_cast %555 : vector<8x1xi1> to vector<8x1xi1>
    %563 = vector.broadcast %562 : vector<8x1xi1> to vector<8x32xi1>
    %564 = arith.select %563, %535, %528 : vector<8x32xi1>, vector<8x32xf32>
    %565 = vector.shape_cast %555 : vector<8x1xi1> to vector<8x1xi1>
    %566 = vector.broadcast %565 : vector<8x1xi1> to vector<8x32xi1>
    %567 = arith.select %566, %549, %542 : vector<8x32xi1>, vector<8x32xf32>
    %c2_i32_75 = arith.constant 2 : i32
    %568 = vector.broadcast %c2_i32_75 : i32 to vector<8x1xi32>
    %569 = arith.shrsi %486, %568 : vector<8x1xi32>
    %c1_i32_76 = arith.constant 1 : i32
    %570 = vector.broadcast %c1_i32_76 : i32 to vector<8x1xi32>
    %571 = arith.andi %569, %570 : vector<8x1xi32>
    %c1_i32_77 = arith.constant 1 : i32
    %572 = vector.broadcast %c1_i32_77 : i32 to vector<8x1xi32>
    %573 = arith.cmpi eq, %571, %572 : vector<8x1xi32>
    %574 = vector.shape_cast %573 : vector<8x1xi1> to vector<8x1xi1>
    %575 = vector.broadcast %574 : vector<8x1xi1> to vector<8x32xi1>
    %576 = arith.select %575, %561, %558 : vector<8x32xi1>, vector<8x32xf32>
    %577 = vector.shape_cast %573 : vector<8x1xi1> to vector<8x1xi1>
    %578 = vector.broadcast %577 : vector<8x1xi1> to vector<8x32xi1>
    %579 = arith.select %578, %567, %564 : vector<8x32xi1>, vector<8x32xf32>
    %c3_i32_78 = arith.constant 3 : i32
    %580 = vector.broadcast %c3_i32_78 : i32 to vector<8x1xi32>
    %581 = arith.shrsi %486, %580 : vector<8x1xi32>
    %c1_i32_79 = arith.constant 1 : i32
    %582 = vector.broadcast %c1_i32_79 : i32 to vector<8x1xi32>
    %583 = arith.andi %581, %582 : vector<8x1xi32>
    %c1_i32_80 = arith.constant 1 : i32
    %584 = vector.broadcast %c1_i32_80 : i32 to vector<8x1xi32>
    %585 = arith.cmpi eq, %583, %584 : vector<8x1xi32>
    %586 = vector.shape_cast %585 : vector<8x1xi1> to vector<8x1xi1>
    %587 = vector.broadcast %586 : vector<8x1xi1> to vector<8x32xi1>
    %588 = arith.select %587, %579, %576 : vector<8x32xi1>, vector<8x32xf32>
    %589 = arith.addf %588, %484 : vector<8x32xf32>
    %590 = math.tanh %589 : vector<8x32xf32>
    %591 = arith.truncf %590 : vector<8x32xf32> to vector<8x32xbf16>
    %cst_81 = arith.constant dense<0.000000e+00> : vector<8x48xf32>
    %592 = tpu.matmul %591, %13, %cst_81 {dimension_numbers = #tpu.dot_dimension_numbers<[1], [0], [0], [1], [0, 0, 1, 1], [], []>} : vector<8x32xbf16>, vector<32x48xbf16>, vector<8x48xf32> -> vector<8x48xf32>
    %593 = vector.extract_strided_slice %592 {offsets = [0, 0], sizes = [8, 16], strides = [1, 1]} : vector<8x48xf32> to vector<8x16xf32>
    %594 = arith.addf %593, %9 : vector<8x16xf32>
    %595 = vector.extract_strided_slice %592 {offsets = [0, 16], sizes = [8, 32], strides = [1, 1]} : vector<8x48xf32> to vector<8x32xf32>
    %596 = tpu.reduce_index %594 {axis = 1 : i32, kind = #tpu.reduction_kind<arg_max>} : vector<8x16xf32> -> vector<8xi32>
    %597 = vector.shape_cast %596 : vector<8xi32> to vector<8x1xi32>
    %c40 = arith.constant 40 : index
    %c0_82 = arith.constant 0 : index
    %598 = vector.load %arg9[%c40, %c0_82] : memref<64x16xf32, #tpu.memory_space<vmem>>, vector<8x16xf32>
    tpu.vector_store %arg9[%c40, %c0_82], %594 {strides = array<i32>} : memref<64x16xf32, #tpu.memory_space<vmem>>, vector<8x16xf32>,
    %c0_i32_83 = arith.constant 0 : i32
    %599 = vector.broadcast %c0_i32_83 : i32 to vector<8x1xi32>
    %600 = arith.shrsi %597, %599 : vector<8x1xi32>
    %c1_i32_84 = arith.constant 1 : i32
    %601 = vector.broadcast %c1_i32_84 : i32 to vector<8x1xi32>
    %602 = arith.andi %600, %601 : vector<8x1xi32>
    %c1_i32_85 = arith.constant 1 : i32
    %603 = vector.broadcast %c1_i32_85 : i32 to vector<8x1xi32>
    %604 = arith.cmpi eq, %602, %603 : vector<8x1xi32>
    %605 = vector.shape_cast %604 : vector<8x1xi1> to vector<8x1xi1>
    %606 = vector.broadcast %605 : vector<8x1xi1> to vector<8x32xi1>
    %607 = vector.shape_cast %16 : vector<1x32xf32> to vector<1x32xf32>
    %608 = vector.broadcast %607 : vector<1x32xf32> to vector<8x32xf32>
    %609 = vector.shape_cast %15 : vector<1x32xf32> to vector<1x32xf32>
    %610 = vector.broadcast %609 : vector<1x32xf32> to vector<8x32xf32>
    %611 = arith.select %606, %608, %610 : vector<8x32xi1>, vector<8x32xf32>
    %612 = vector.shape_cast %604 : vector<8x1xi1> to vector<8x1xi1>
    %613 = vector.broadcast %612 : vector<8x1xi1> to vector<8x32xi1>
    %614 = vector.shape_cast %18 : vector<1x32xf32> to vector<1x32xf32>
    %615 = vector.broadcast %614 : vector<1x32xf32> to vector<8x32xf32>
    %616 = vector.shape_cast %17 : vector<1x32xf32> to vector<1x32xf32>
    %617 = vector.broadcast %616 : vector<1x32xf32> to vector<8x32xf32>
    %618 = arith.select %613, %615, %617 : vector<8x32xi1>, vector<8x32xf32>
    %619 = vector.shape_cast %604 : vector<8x1xi1> to vector<8x1xi1>
    %620 = vector.broadcast %619 : vector<8x1xi1> to vector<8x32xi1>
    %621 = vector.shape_cast %20 : vector<1x32xf32> to vector<1x32xf32>
    %622 = vector.broadcast %621 : vector<1x32xf32> to vector<8x32xf32>
    %623 = vector.shape_cast %19 : vector<1x32xf32> to vector<1x32xf32>
    %624 = vector.broadcast %623 : vector<1x32xf32> to vector<8x32xf32>
    %625 = arith.select %620, %622, %624 : vector<8x32xi1>, vector<8x32xf32>
    %626 = vector.shape_cast %604 : vector<8x1xi1> to vector<8x1xi1>
    %627 = vector.broadcast %626 : vector<8x1xi1> to vector<8x32xi1>
    %628 = vector.shape_cast %22 : vector<1x32xf32> to vector<1x32xf32>
    %629 = vector.broadcast %628 : vector<1x32xf32> to vector<8x32xf32>
    %630 = vector.shape_cast %21 : vector<1x32xf32> to vector<1x32xf32>
    %631 = vector.broadcast %630 : vector<1x32xf32> to vector<8x32xf32>
    %632 = arith.select %627, %629, %631 : vector<8x32xi1>, vector<8x32xf32>
    %633 = vector.shape_cast %604 : vector<8x1xi1> to vector<8x1xi1>
    %634 = vector.broadcast %633 : vector<8x1xi1> to vector<8x32xi1>
    %635 = vector.shape_cast %24 : vector<1x32xf32> to vector<1x32xf32>
    %636 = vector.broadcast %635 : vector<1x32xf32> to vector<8x32xf32>
    %637 = vector.shape_cast %23 : vector<1x32xf32> to vector<1x32xf32>
    %638 = vector.broadcast %637 : vector<1x32xf32> to vector<8x32xf32>
    %639 = arith.select %634, %636, %638 : vector<8x32xi1>, vector<8x32xf32>
    %640 = vector.shape_cast %604 : vector<8x1xi1> to vector<8x1xi1>
    %641 = vector.broadcast %640 : vector<8x1xi1> to vector<8x32xi1>
    %642 = vector.shape_cast %26 : vector<1x32xf32> to vector<1x32xf32>
    %643 = vector.broadcast %642 : vector<1x32xf32> to vector<8x32xf32>
    %644 = vector.shape_cast %25 : vector<1x32xf32> to vector<1x32xf32>
    %645 = vector.broadcast %644 : vector<1x32xf32> to vector<8x32xf32>
    %646 = arith.select %641, %643, %645 : vector<8x32xi1>, vector<8x32xf32>
    %647 = vector.shape_cast %604 : vector<8x1xi1> to vector<8x1xi1>
    %648 = vector.broadcast %647 : vector<8x1xi1> to vector<8x32xi1>
    %649 = vector.shape_cast %28 : vector<1x32xf32> to vector<1x32xf32>
    %650 = vector.broadcast %649 : vector<1x32xf32> to vector<8x32xf32>
    %651 = vector.shape_cast %27 : vector<1x32xf32> to vector<1x32xf32>
    %652 = vector.broadcast %651 : vector<1x32xf32> to vector<8x32xf32>
    %653 = arith.select %648, %650, %652 : vector<8x32xi1>, vector<8x32xf32>
    %654 = vector.shape_cast %604 : vector<8x1xi1> to vector<8x1xi1>
    %655 = vector.broadcast %654 : vector<8x1xi1> to vector<8x32xi1>
    %656 = vector.shape_cast %30 : vector<1x32xf32> to vector<1x32xf32>
    %657 = vector.broadcast %656 : vector<1x32xf32> to vector<8x32xf32>
    %658 = vector.shape_cast %29 : vector<1x32xf32> to vector<1x32xf32>
    %659 = vector.broadcast %658 : vector<1x32xf32> to vector<8x32xf32>
    %660 = arith.select %655, %657, %659 : vector<8x32xi1>, vector<8x32xf32>
    %c1_i32_86 = arith.constant 1 : i32
    %661 = vector.broadcast %c1_i32_86 : i32 to vector<8x1xi32>
    %662 = arith.shrsi %597, %661 : vector<8x1xi32>
    %c1_i32_87 = arith.constant 1 : i32
    %663 = vector.broadcast %c1_i32_87 : i32 to vector<8x1xi32>
    %664 = arith.andi %662, %663 : vector<8x1xi32>
    %c1_i32_88 = arith.constant 1 : i32
    %665 = vector.broadcast %c1_i32_88 : i32 to vector<8x1xi32>
    %666 = arith.cmpi eq, %664, %665 : vector<8x1xi32>
    %667 = vector.shape_cast %666 : vector<8x1xi1> to vector<8x1xi1>
    %668 = vector.broadcast %667 : vector<8x1xi1> to vector<8x32xi1>
    %669 = arith.select %668, %618, %611 : vector<8x32xi1>, vector<8x32xf32>
    %670 = vector.shape_cast %666 : vector<8x1xi1> to vector<8x1xi1>
    %671 = vector.broadcast %670 : vector<8x1xi1> to vector<8x32xi1>
    %672 = arith.select %671, %632, %625 : vector<8x32xi1>, vector<8x32xf32>
    %673 = vector.shape_cast %666 : vector<8x1xi1> to vector<8x1xi1>
    %674 = vector.broadcast %673 : vector<8x1xi1> to vector<8x32xi1>
    %675 = arith.select %674, %646, %639 : vector<8x32xi1>, vector<8x32xf32>
    %676 = vector.shape_cast %666 : vector<8x1xi1> to vector<8x1xi1>
    %677 = vector.broadcast %676 : vector<8x1xi1> to vector<8x32xi1>
    %678 = arith.select %677, %660, %653 : vector<8x32xi1>, vector<8x32xf32>
    %c2_i32_89 = arith.constant 2 : i32
    %679 = vector.broadcast %c2_i32_89 : i32 to vector<8x1xi32>
    %680 = arith.shrsi %597, %679 : vector<8x1xi32>
    %c1_i32_90 = arith.constant 1 : i32
    %681 = vector.broadcast %c1_i32_90 : i32 to vector<8x1xi32>
    %682 = arith.andi %680, %681 : vector<8x1xi32>
    %c1_i32_91 = arith.constant 1 : i32
    %683 = vector.broadcast %c1_i32_91 : i32 to vector<8x1xi32>
    %684 = arith.cmpi eq, %682, %683 : vector<8x1xi32>
    %685 = vector.shape_cast %684 : vector<8x1xi1> to vector<8x1xi1>
    %686 = vector.broadcast %685 : vector<8x1xi1> to vector<8x32xi1>
    %687 = arith.select %686, %672, %669 : vector<8x32xi1>, vector<8x32xf32>
    %688 = vector.shape_cast %684 : vector<8x1xi1> to vector<8x1xi1>
    %689 = vector.broadcast %688 : vector<8x1xi1> to vector<8x32xi1>
    %690 = arith.select %689, %678, %675 : vector<8x32xi1>, vector<8x32xf32>
    %c3_i32_92 = arith.constant 3 : i32
    %691 = vector.broadcast %c3_i32_92 : i32 to vector<8x1xi32>
    %692 = arith.shrsi %597, %691 : vector<8x1xi32>
    %c1_i32_93 = arith.constant 1 : i32
    %693 = vector.broadcast %c1_i32_93 : i32 to vector<8x1xi32>
    %694 = arith.andi %692, %693 : vector<8x1xi32>
    %c1_i32_94 = arith.constant 1 : i32
    %695 = vector.broadcast %c1_i32_94 : i32 to vector<8x1xi32>
    %696 = arith.cmpi eq, %694, %695 : vector<8x1xi32>
    %697 = vector.shape_cast %696 : vector<8x1xi1> to vector<8x1xi1>
    %698 = vector.broadcast %697 : vector<8x1xi1> to vector<8x32xi1>
    %699 = arith.select %698, %690, %687 : vector<8x32xi1>, vector<8x32xf32>
    %700 = arith.addf %699, %595 : vector<8x32xf32>
    %701 = math.tanh %700 : vector<8x32xf32>
    %702 = arith.truncf %701 : vector<8x32xf32> to vector<8x32xbf16>
    %cst_95 = arith.constant dense<0.000000e+00> : vector<8x48xf32>
    %703 = tpu.matmul %702, %13, %cst_95 {dimension_numbers = #tpu.dot_dimension_numbers<[1], [0], [0], [1], [0, 0, 1, 1], [], []>} : vector<8x32xbf16>, vector<32x48xbf16>, vector<8x48xf32> -> vector<8x48xf32>
    %704 = vector.extract_strided_slice %703 {offsets = [0, 0], sizes = [8, 16], strides = [1, 1]} : vector<8x48xf32> to vector<8x16xf32>
    %705 = arith.addf %704, %9 : vector<8x16xf32>
    %706 = vector.extract_strided_slice %703 {offsets = [0, 16], sizes = [8, 32], strides = [1, 1]} : vector<8x48xf32> to vector<8x32xf32>
    %707 = tpu.reduce_index %705 {axis = 1 : i32, kind = #tpu.reduction_kind<arg_max>} : vector<8x16xf32> -> vector<8xi32>
    %708 = vector.shape_cast %707 : vector<8xi32> to vector<8x1xi32>
    %c48 = arith.constant 48 : index
    %c0_96 = arith.constant 0 : index
    %709 = vector.load %arg9[%c48, %c0_96] : memref<64x16xf32, #tpu.memory_space<vmem>>, vector<8x16xf32>
    tpu.vector_store %arg9[%c48, %c0_96], %705 {strides = array<i32>} : memref<64x16xf32, #tpu.memory_space<vmem>>, vector<8x16xf32>,
    %c0_i32_97 = arith.constant 0 : i32
    %710 = vector.broadcast %c0_i32_97 : i32 to vector<8x1xi32>
    %711 = arith.shrsi %708, %710 : vector<8x1xi32>
    %c1_i32_98 = arith.constant 1 : i32
    %712 = vector.broadcast %c1_i32_98 : i32 to vector<8x1xi32>
    %713 = arith.andi %711, %712 : vector<8x1xi32>
    %c1_i32_99 = arith.constant 1 : i32
    %714 = vector.broadcast %c1_i32_99 : i32 to vector<8x1xi32>
    %715 = arith.cmpi eq, %713, %714 : vector<8x1xi32>
    %716 = vector.shape_cast %715 : vector<8x1xi1> to vector<8x1xi1>
    %717 = vector.broadcast %716 : vector<8x1xi1> to vector<8x32xi1>
    %718 = vector.shape_cast %16 : vector<1x32xf32> to vector<1x32xf32>
    %719 = vector.broadcast %718 : vector<1x32xf32> to vector<8x32xf32>
    %720 = vector.shape_cast %15 : vector<1x32xf32> to vector<1x32xf32>
    %721 = vector.broadcast %720 : vector<1x32xf32> to vector<8x32xf32>
    %722 = arith.select %717, %719, %721 : vector<8x32xi1>, vector<8x32xf32>
    %723 = vector.shape_cast %715 : vector<8x1xi1> to vector<8x1xi1>
    %724 = vector.broadcast %723 : vector<8x1xi1> to vector<8x32xi1>
    %725 = vector.shape_cast %18 : vector<1x32xf32> to vector<1x32xf32>
    %726 = vector.broadcast %725 : vector<1x32xf32> to vector<8x32xf32>
    %727 = vector.shape_cast %17 : vector<1x32xf32> to vector<1x32xf32>
    %728 = vector.broadcast %727 : vector<1x32xf32> to vector<8x32xf32>
    %729 = arith.select %724, %726, %728 : vector<8x32xi1>, vector<8x32xf32>
    %730 = vector.shape_cast %715 : vector<8x1xi1> to vector<8x1xi1>
    %731 = vector.broadcast %730 : vector<8x1xi1> to vector<8x32xi1>
    %732 = vector.shape_cast %20 : vector<1x32xf32> to vector<1x32xf32>
    %733 = vector.broadcast %732 : vector<1x32xf32> to vector<8x32xf32>
    %734 = vector.shape_cast %19 : vector<1x32xf32> to vector<1x32xf32>
    %735 = vector.broadcast %734 : vector<1x32xf32> to vector<8x32xf32>
    %736 = arith.select %731, %733, %735 : vector<8x32xi1>, vector<8x32xf32>
    %737 = vector.shape_cast %715 : vector<8x1xi1> to vector<8x1xi1>
    %738 = vector.broadcast %737 : vector<8x1xi1> to vector<8x32xi1>
    %739 = vector.shape_cast %22 : vector<1x32xf32> to vector<1x32xf32>
    %740 = vector.broadcast %739 : vector<1x32xf32> to vector<8x32xf32>
    %741 = vector.shape_cast %21 : vector<1x32xf32> to vector<1x32xf32>
    %742 = vector.broadcast %741 : vector<1x32xf32> to vector<8x32xf32>
    %743 = arith.select %738, %740, %742 : vector<8x32xi1>, vector<8x32xf32>
    %744 = vector.shape_cast %715 : vector<8x1xi1> to vector<8x1xi1>
    %745 = vector.broadcast %744 : vector<8x1xi1> to vector<8x32xi1>
    %746 = vector.shape_cast %24 : vector<1x32xf32> to vector<1x32xf32>
    %747 = vector.broadcast %746 : vector<1x32xf32> to vector<8x32xf32>
    %748 = vector.shape_cast %23 : vector<1x32xf32> to vector<1x32xf32>
    %749 = vector.broadcast %748 : vector<1x32xf32> to vector<8x32xf32>
    %750 = arith.select %745, %747, %749 : vector<8x32xi1>, vector<8x32xf32>
    %751 = vector.shape_cast %715 : vector<8x1xi1> to vector<8x1xi1>
    %752 = vector.broadcast %751 : vector<8x1xi1> to vector<8x32xi1>
    %753 = vector.shape_cast %26 : vector<1x32xf32> to vector<1x32xf32>
    %754 = vector.broadcast %753 : vector<1x32xf32> to vector<8x32xf32>
    %755 = vector.shape_cast %25 : vector<1x32xf32> to vector<1x32xf32>
    %756 = vector.broadcast %755 : vector<1x32xf32> to vector<8x32xf32>
    %757 = arith.select %752, %754, %756 : vector<8x32xi1>, vector<8x32xf32>
    %758 = vector.shape_cast %715 : vector<8x1xi1> to vector<8x1xi1>
    %759 = vector.broadcast %758 : vector<8x1xi1> to vector<8x32xi1>
    %760 = vector.shape_cast %28 : vector<1x32xf32> to vector<1x32xf32>
    %761 = vector.broadcast %760 : vector<1x32xf32> to vector<8x32xf32>
    %762 = vector.shape_cast %27 : vector<1x32xf32> to vector<1x32xf32>
    %763 = vector.broadcast %762 : vector<1x32xf32> to vector<8x32xf32>
    %764 = arith.select %759, %761, %763 : vector<8x32xi1>, vector<8x32xf32>
    %765 = vector.shape_cast %715 : vector<8x1xi1> to vector<8x1xi1>
    %766 = vector.broadcast %765 : vector<8x1xi1> to vector<8x32xi1>
    %767 = vector.shape_cast %30 : vector<1x32xf32> to vector<1x32xf32>
    %768 = vector.broadcast %767 : vector<1x32xf32> to vector<8x32xf32>
    %769 = vector.shape_cast %29 : vector<1x32xf32> to vector<1x32xf32>
    %770 = vector.broadcast %769 : vector<1x32xf32> to vector<8x32xf32>
    %771 = arith.select %766, %768, %770 : vector<8x32xi1>, vector<8x32xf32>
    %c1_i32_100 = arith.constant 1 : i32
    %772 = vector.broadcast %c1_i32_100 : i32 to vector<8x1xi32>
    %773 = arith.shrsi %708, %772 : vector<8x1xi32>
    %c1_i32_101 = arith.constant 1 : i32
    %774 = vector.broadcast %c1_i32_101 : i32 to vector<8x1xi32>
    %775 = arith.andi %773, %774 : vector<8x1xi32>
    %c1_i32_102 = arith.constant 1 : i32
    %776 = vector.broadcast %c1_i32_102 : i32 to vector<8x1xi32>
    %777 = arith.cmpi eq, %775, %776 : vector<8x1xi32>
    %778 = vector.shape_cast %777 : vector<8x1xi1> to vector<8x1xi1>
    %779 = vector.broadcast %778 : vector<8x1xi1> to vector<8x32xi1>
    %780 = arith.select %779, %729, %722 : vector<8x32xi1>, vector<8x32xf32>
    %781 = vector.shape_cast %777 : vector<8x1xi1> to vector<8x1xi1>
    %782 = vector.broadcast %781 : vector<8x1xi1> to vector<8x32xi1>
    %783 = arith.select %782, %743, %736 : vector<8x32xi1>, vector<8x32xf32>
    %784 = vector.shape_cast %777 : vector<8x1xi1> to vector<8x1xi1>
    %785 = vector.broadcast %784 : vector<8x1xi1> to vector<8x32xi1>
    %786 = arith.select %785, %757, %750 : vector<8x32xi1>, vector<8x32xf32>
    %787 = vector.shape_cast %777 : vector<8x1xi1> to vector<8x1xi1>
    %788 = vector.broadcast %787 : vector<8x1xi1> to vector<8x32xi1>
    %789 = arith.select %788, %771, %764 : vector<8x32xi1>, vector<8x32xf32>
    %c2_i32_103 = arith.constant 2 : i32
    %790 = vector.broadcast %c2_i32_103 : i32 to vector<8x1xi32>
    %791 = arith.shrsi %708, %790 : vector<8x1xi32>
    %c1_i32_104 = arith.constant 1 : i32
    %792 = vector.broadcast %c1_i32_104 : i32 to vector<8x1xi32>
    %793 = arith.andi %791, %792 : vector<8x1xi32>
    %c1_i32_105 = arith.constant 1 : i32
    %794 = vector.broadcast %c1_i32_105 : i32 to vector<8x1xi32>
    %795 = arith.cmpi eq, %793, %794 : vector<8x1xi32>
    %796 = vector.shape_cast %795 : vector<8x1xi1> to vector<8x1xi1>
    %797 = vector.broadcast %796 : vector<8x1xi1> to vector<8x32xi1>
    %798 = arith.select %797, %783, %780 : vector<8x32xi1>, vector<8x32xf32>
    %799 = vector.shape_cast %795 : vector<8x1xi1> to vector<8x1xi1>
    %800 = vector.broadcast %799 : vector<8x1xi1> to vector<8x32xi1>
    %801 = arith.select %800, %789, %786 : vector<8x32xi1>, vector<8x32xf32>
    %c3_i32_106 = arith.constant 3 : i32
    %802 = vector.broadcast %c3_i32_106 : i32 to vector<8x1xi32>
    %803 = arith.shrsi %708, %802 : vector<8x1xi32>
    %c1_i32_107 = arith.constant 1 : i32
    %804 = vector.broadcast %c1_i32_107 : i32 to vector<8x1xi32>
    %805 = arith.andi %803, %804 : vector<8x1xi32>
    %c1_i32_108 = arith.constant 1 : i32
    %806 = vector.broadcast %c1_i32_108 : i32 to vector<8x1xi32>
    %807 = arith.cmpi eq, %805, %806 : vector<8x1xi32>
    %808 = vector.shape_cast %807 : vector<8x1xi1> to vector<8x1xi1>
    %809 = vector.broadcast %808 : vector<8x1xi1> to vector<8x32xi1>
    %810 = arith.select %809, %801, %798 : vector<8x32xi1>, vector<8x32xf32>
    %811 = arith.addf %810, %706 : vector<8x32xf32>
    %812 = math.tanh %811 : vector<8x32xf32>
    %813 = arith.truncf %812 : vector<8x32xf32> to vector<8x32xbf16>
    %cst_109 = arith.constant dense<0.000000e+00> : vector<8x48xf32>
    %814 = tpu.matmul %813, %13, %cst_109 {dimension_numbers = #tpu.dot_dimension_numbers<[1], [0], [0], [1], [0, 0, 1, 1], [], []>} : vector<8x32xbf16>, vector<32x48xbf16>, vector<8x48xf32> -> vector<8x48xf32>
    %815 = vector.extract_strided_slice %814 {offsets = [0, 0], sizes = [8, 16], strides = [1, 1]} : vector<8x48xf32> to vector<8x16xf32>
    %816 = arith.addf %815, %9 : vector<8x16xf32>
    %817 = tpu.reduce_index %816 {axis = 1 : i32, kind = #tpu.reduction_kind<arg_max>} : vector<8x16xf32> -> vector<8xi32>
    %818 = vector.shape_cast %817 : vector<8xi32> to vector<8x1xi32>
    %c56 = arith.constant 56 : index
    %c0_110 = arith.constant 0 : index
    %819 = vector.load %arg9[%c56, %c0_110] : memref<64x16xf32, #tpu.memory_space<vmem>>, vector<8x16xf32>
    tpu.vector_store %arg9[%c56, %c0_110], %816 {strides = array<i32>} : memref<64x16xf32, #tpu.memory_space<vmem>>, vector<8x16xf32>,
    %c0_111 = arith.constant 0 : index
    %c0_112 = arith.constant 0 : index
    %820 = vector.load %arg9[%c0_111, %c0_112] : memref<64x16xf32, #tpu.memory_space<vmem>>, vector<64x16xf32>
    %cst_113 = arith.constant dense<0xFF800000> : vector<64xf32>
    %821 = vector.multi_reduction <maximumf>, %820, %cst_113 [1] : vector<64x16xf32> to vector<64xf32>
    %822 = vector.shape_cast %821 : vector<64xf32> to vector<64x1xf32>
    %823 = vector.broadcast %822 : vector<64x1xf32> to vector<64x16xf32>
    %824 = arith.subf %820, %823 : vector<64x16xf32>
    %825 = math.exp %824 : vector<64x16xf32>
    %cst_114 = arith.constant dense<0.000000e+00> : vector<64xf32>
    %826 = vector.multi_reduction <add>, %825, %cst_114 [1] : vector<64x16xf32> to vector<64xf32>
    %827 = vector.shape_cast %826 : vector<64xf32> to vector<64x1xf32>
    %828 = math.log %827 : vector<64x1xf32>
    %cst_115 = arith.constant 0.000000e+00 : f32
    %829 = vector.broadcast %cst_115 : f32 to vector<64x1xf32>
    %830 = arith.subf %829, %828 : vector<64x1xf32>
    %831 = vector.broadcast %822 : vector<64x1xf32> to vector<64x16xf32>
    %832 = arith.subf %820, %831 : vector<64x16xf32>
    %833 = vector.broadcast %828 : vector<64x1xf32> to vector<64x16xf32>
    %834 = arith.subf %832, %833 : vector<64x16xf32>
    %835 = tpu.reciprocal %827 {approx = true} : vector<64x1xf32> -> vector<64x1xf32>
    %836 = vector.broadcast %835 : vector<64x1xf32> to vector<64x16xf32>
    %837 = arith.mulf %825, %836 : vector<64x16xf32>
    %838 = arith.mulf %837, %834 : vector<64x16xf32>
    %cst_116 = arith.constant dense<0.000000e+00> : vector<64xf32>
    %839 = vector.multi_reduction <add>, %838, %cst_116 [1] : vector<64x16xf32> to vector<64xf32>
    %840 = vector.shape_cast %839 : vector<64xf32> to vector<64x1xf32>
    %cst_117 = arith.constant 0.000000e+00 : f32
    %841 = vector.broadcast %cst_117 : f32 to vector<64x1xf32>
    %842 = arith.subf %841, %840 : vector<64x1xf32>
    %cst_118 = arith.constant 0.000000e+00 : f32
    %843 = vector.broadcast %cst_118 : f32 to vector<8x1xf32>
    %844 = arith.sitofp %42 : vector<8x1xi32> to vector<8x1xf32>
    %845 = arith.sitofp %153 : vector<8x1xi32> to vector<8x1xf32>
    %846 = arith.sitofp %264 : vector<8x1xi32> to vector<8x1xf32>
    %847 = arith.sitofp %375 : vector<8x1xi32> to vector<8x1xf32>
    %848 = arith.sitofp %486 : vector<8x1xi32> to vector<8x1xf32>
    %849 = arith.sitofp %597 : vector<8x1xi32> to vector<8x1xf32>
    %850 = arith.sitofp %708 : vector<8x1xi32> to vector<8x1xf32>
    %851 = arith.sitofp %818 : vector<8x1xi32> to vector<8x1xf32>
    %852 = vector.extract_strided_slice %830 {offsets = [0, 0], sizes = [8, 1], strides = [1, 1]} : vector<64x1xf32> to vector<8x1xf32>
    %853 = vector.extract_strided_slice %830 {offsets = [8, 0], sizes = [8, 1], strides = [1, 1]} : vector<64x1xf32> to vector<8x1xf32>
    %854 = vector.extract_strided_slice %830 {offsets = [16, 0], sizes = [8, 1], strides = [1, 1]} : vector<64x1xf32> to vector<8x1xf32>
    %855 = vector.extract_strided_slice %830 {offsets = [24, 0], sizes = [8, 1], strides = [1, 1]} : vector<64x1xf32> to vector<8x1xf32>
    %856 = vector.extract_strided_slice %830 {offsets = [32, 0], sizes = [8, 1], strides = [1, 1]} : vector<64x1xf32> to vector<8x1xf32>
    %857 = vector.extract_strided_slice %830 {offsets = [40, 0], sizes = [8, 1], strides = [1, 1]} : vector<64x1xf32> to vector<8x1xf32>
    %858 = vector.extract_strided_slice %830 {offsets = [48, 0], sizes = [8, 1], strides = [1, 1]} : vector<64x1xf32> to vector<8x1xf32>
    %859 = vector.extract_strided_slice %830 {offsets = [56, 0], sizes = [8, 1], strides = [1, 1]} : vector<64x1xf32> to vector<8x1xf32>
    %860 = vector.extract_strided_slice %842 {offsets = [0, 0], sizes = [8, 1], strides = [1, 1]} : vector<64x1xf32> to vector<8x1xf32>
    %861 = vector.extract_strided_slice %842 {offsets = [8, 0], sizes = [8, 1], strides = [1, 1]} : vector<64x1xf32> to vector<8x1xf32>
    %862 = vector.extract_strided_slice %842 {offsets = [16, 0], sizes = [8, 1], strides = [1, 1]} : vector<64x1xf32> to vector<8x1xf32>
    %863 = vector.extract_strided_slice %842 {offsets = [24, 0], sizes = [8, 1], strides = [1, 1]} : vector<64x1xf32> to vector<8x1xf32>
    %864 = vector.extract_strided_slice %842 {offsets = [32, 0], sizes = [8, 1], strides = [1, 1]} : vector<64x1xf32> to vector<8x1xf32>
    %865 = vector.extract_strided_slice %842 {offsets = [40, 0], sizes = [8, 1], strides = [1, 1]} : vector<64x1xf32> to vector<8x1xf32>
    %866 = vector.extract_strided_slice %842 {offsets = [48, 0], sizes = [8, 1], strides = [1, 1]} : vector<64x1xf32> to vector<8x1xf32>
    %867 = vector.extract_strided_slice %842 {offsets = [56, 0], sizes = [8, 1], strides = [1, 1]} : vector<64x1xf32> to vector<8x1xf32>
    %cst_119 = arith.constant 0.000000e+00 : f32
    %868 = vector.broadcast %cst_119 : f32 to vector<8x101xf32>
    %869 = tpu.concatenate %844, %845, %846, %847, %848, %849, %850, %851, %843, %852, %853, %854, %855, %856, %857, %858 in 1 : vector<8x1xf32>, vector<8x1xf32>, vector<8x1xf32>, vector<8x1xf32>, vector<8x1xf32>, vector<8x1xf32>, vector<8x1xf32>, vector<8x1xf32>, vector<8x1xf32>, vector<8x1xf32>, vector<8x1xf32>, vector<8x1xf32>, vector<8x1xf32>, vector<8x1xf32>, vector<8x1xf32>, vector<8x1xf32> -> vector<8x16xf32>
    %870 = tpu.concatenate %859, %843, %860, %861, %862, %863, %864, %865, %866, %867, %843, %868 in 1 : vector<8x1xf32>, vector<8x1xf32>, vector<8x1xf32>, vector<8x1xf32>, vector<8x1xf32>, vector<8x1xf32>, vector<8x1xf32>, vector<8x1xf32>, vector<8x1xf32>, vector<8x1xf32>, vector<8x1xf32>, vector<8x101xf32> -> vector<8x112xf32>
    %871 = tpu.concatenate %869, %870 in 1 : vector<8x16xf32>, vector<8x112xf32> -> vector<8x128xf32>
    %c0_120 = arith.constant 0 : index
    %c0_121 = arith.constant 0 : index
    %872 = vector.load %arg8[%c0_120, %c0_121] : memref<8x128xf32, #tpu.memory_space<vmem>>, vector<8x128xf32>
    tpu.vector_store %arg8[%c0_120, %c0_121], %871 {strides = array<i32>} : memref<8x128xf32, #tpu.memory_space<vmem>>, vector<8x128xf32>,
    return
  }
  func.func @transform_0(%arg0: i32) -> (i32, i32) {
    %c0_i32 = arith.constant 0 : i32
    %c0_i32_0 = arith.constant 0 : i32
    return %arg0, %c0_i32 : i32, i32
  }
  func.func @transform_1(%arg0: i32) -> (i32, i32) {
    %c0_i32 = arith.constant 0 : i32
    %c0_i32_0 = arith.constant 0 : i32
    %c0_i32_1 = arith.constant 0 : i32
    return %c0_i32, %c0_i32_0 : i32, i32
  }
  func.func @transform_2(%arg0: i32) -> (i32, i32) {
    %c0_i32 = arith.constant 0 : i32
    %c0_i32_0 = arith.constant 0 : i32
    %c0_i32_1 = arith.constant 0 : i32
    return %c0_i32, %c0_i32_0 : i32, i32
  }
  func.func @transform_3(%arg0: i32) -> (i32, i32) {
    %c0_i32 = arith.constant 0 : i32
    %c0_i32_0 = arith.constant 0 : i32
    %c0_i32_1 = arith.constant 0 : i32
    return %c0_i32, %c0_i32_0 : i32, i32
  }
  func.func @transform_4(%arg0: i32) -> (i32, i32) {
    %c0_i32 = arith.constant 0 : i32
    %c0_i32_0 = arith.constant 0 : i32
    %c0_i32_1 = arith.constant 0 : i32
    return %c0_i32, %c0_i32_0 : i32, i32
  }
  func.func @transform_5(%arg0: i32) -> (i32, i32) {
    %c0_i32 = arith.constant 0 : i32
    %c0_i32_0 = arith.constant 0 : i32
    %c0_i32_1 = arith.constant 0 : i32
    return %c0_i32, %c0_i32_0 : i32, i32
  }
  func.func @transform_6(%arg0: i32) -> (i32, i32) {
    %c0_i32 = arith.constant 0 : i32
    %c0_i32_0 = arith.constant 0 : i32
    %c0_i32_1 = arith.constant 0 : i32
    return %c0_i32, %c0_i32_0 : i32, i32
  }
  func.func @transform_7(%arg0: i32) -> (i32, i32) {
    %c0_i32 = arith.constant 0 : i32
    %c0_i32_0 = arith.constant 0 : i32
    return %arg0, %c0_i32 : i32, i32
  }
}

</mosaic_0001>

<bundles_post_ra>
// kernel: tpu_custom_call.1
= control target key start
LH: loop header
LB: loop body
LE: loop exit
PB: predicated region body
PF: predicated region fallthrough
CT: control target
= control target key end

     0   :  { %12 = vsyncpa [#allocation4], 0  ;;  %s2191_s0 = inlined_call_operand.hbm [shape: f32[8,16], index: 0, kind: input, shape index: {}]   ;;  %s2192_s1 = inlined_call_operand.hbm [shape: bf16[16,32], index: 1, kind: input, shape index: {}]   ;;  %s2193_s2 = inlined_call_operand.vmem [shape: f32[1,32], index: 2, kind: input, shape index: {}]   ;;  %s2194_s3 = inlined_call_operand.vmem [shape: f32[1,32], index: 3, kind: input, shape index: {}]   ;;  %s2195_s4 = inlined_call_operand.hbm [shape: f32[1,16], index: 4, kind: input, shape index: {}]   ;;  %s2196_s5 = inlined_call_operand.vmem [shape: bf16[32,48], index: 5, kind: input, shape index: {}]   ;;  %s2197_s6 = inlined_call_operand.hbm [shape: f32[16,32], index: 6, kind: input, shape index: {}]   ;;  %s2198_s7 = inlined_call_operand.hbm [shape: f32[8,128], index: 7, kind: output, shape index: {}]  }
   0x1   :  { %13 = vsyncpa [#allocation7], 0 }
   0x2   :  { %14 = vsyncpa [#allocation10], 0 }
   0x3   :  { %15 = vsyncpa [#allocation5], 0  ;;  %s1520_s24 = smov [#allocation6]   ;;  %s1402_s28 = scalar_lea.hbm %s2192_s1, 128 }
   0x4   :  { %s31_s25 = sshll.u32 %s1520_s24, 4  ;;  %p1403_p0 = scmp.ne.s32.totalorder %s2192_s1, %s1402_s28  ;;  %s32_s25 = int_to_ptr.vmem [resolvable:$true] %s31_s25 }
   0x5   :  { %p1406_p1 = scmp.lt.u32.totalorder %s1402_s28, %s2192_s1 }
   0x7   :  { %p1408_p2 = pnand %p1406_p1, %p1403_p0 }
   0x9   :  { %1411 = shalt.err (!%p1408_p2)
}
   0xa   :  { %s1412_s10 = scalar_lea.vmem %s32_s25, 128  ;;  %p1417_p4 = scmp.lt.s32.totalorder %s32_s25, %s32_s25 }
   0xb   :  { %p1413_p3 = scmp.ne.s32.totalorder %s32_s25, %s1412_s10  ;;  %p1418_p5 = scmp.lt.s32.totalorder %s1412_s10, %s1412_s10 }
   0xd   :  { %p1419_p6 = por %p1418_p5, %p1417_p4 }
   0xf   :  { %p1420_p7 = pnand %p1419_p6, %p1413_p3 }
  0x11   :  { %1423 = shalt.err (!%p1420_p7)
}
  0x12   :  { %s1521_s11 = smov 64   ;;  %s1522_s12 = smov 4  }
  0x13   :  { %37 = dma.hbm_to_vmem [thread:$0]  %s2192_s1, 128, %s32_s25, [#allocation7], %s1521_s11, %s1521_s11, %s1522_s12  }
  0x14   :  { %s1523_s15 = smov [#allocation3]   ;;  %s1524_s17 = smov [#allocation8]  }
  0x15   :  { %s22_s16 = sshll.u32 %s1523_s15, 4  ;;  %s48_s18 = sshll.u32 %s1524_s17, 4  ;;  %s23_s16 = int_to_ptr.vmem [resolvable:$true] %s22_s16  ;;  %s49_s18 = int_to_ptr.vmem [resolvable:$true] %s48_s18 }
  0x16   :  { %s1424_s21 = scalar_lea.hbm %s2191_s0, 128 }
  0x17   :  { %p1425_p8 = scmp.ne.s32.totalorder %s2191_s0, %s1424_s21  ;;  %p1428_p9 = scmp.lt.u32.totalorder %s1424_s21, %s2191_s0 }
  0x19   :  { %p1430_p10 = pnand %p1428_p9, %p1425_p8 }
  0x1b   :  { %1433 = shalt.err (!%p1430_p10)
}
  0x1c   :  { %s1434_s1 = scalar_lea.vmem %s23_s16, 128  ;;  %p1439_p12 = scmp.lt.s32.totalorder %s23_s16, %s23_s16 }
  0x1d   :  { %p1435_p11 = scmp.ne.s32.totalorder %s23_s16, %s1434_s1  ;;  %p1440_p13 = scmp.lt.s32.totalorder %s1434_s1, %s1434_s1 }
  0x1f   :  { %p1441_p0 = por %p1440_p13, %p1439_p12 }
  0x21   :  { %p1442_p1 = pnand %p1441_p0, %p1435_p11 }
  0x23   :  { %1445 = shalt.err (!%p1442_p1)
}
  0x24   :  { %25 = dma.hbm_to_vmem [thread:$0]  %s2191_s0, 128, %s23_s16, [#allocation4]  }
  0x25   :  { %s1446_s30 = scalar_lea.hbm %s2195_s4, 16 }
  0x26   :  { %p1447_p2 = scmp.ne.s32.totalorder %s2195_s4, %s1446_s30  ;;  %p1450_p3 = scmp.lt.u32.totalorder %s1446_s30, %s2195_s4 }
  0x28   :  { %p1452_p4 = pnand %p1450_p3, %p1447_p2 }
  0x2a   :  { %1455 = shalt.err (!%p1452_p4)
}
  0x2b   :  { %s1456_s12 = scalar_lea.vmem %s49_s18, 16  ;;  %s1460_s13 = scalar_lea.vmem %s49_s18, 32 }
  0x2c   :  { %p1457_p5 = scmp.ne.s32.totalorder %s49_s18, %s1456_s12  ;;  %p1461_p6 = scmp.lt.s32.totalorder %s49_s18, %s49_s18 }
  0x2d   :  { %p1462_p7 = scmp.lt.s32.totalorder %s1460_s13, %s1456_s12 }
  0x2f   :  { %p1463_p8 = por %p1462_p7, %p1461_p6 }
  0x31   :  { %p1464_p9 = pnand %p1463_p8, %p1457_p5 }
  0x33   :  { %1467 = shalt.err (!%p1464_p9)
}
  0x34   :  { %51 = dma.hbm_to_vmem [thread:$0]  %s2195_s4, 16, %s49_s18, [#allocation7]  }
  0x35   :  { %s1525_s15 = smov [#allocation9]   ;;  %s1468_s20 = scalar_lea.hbm %s2197_s6, 256 }
  0x36   :  { %s59_s16 = sshll.u32 %s1525_s15, 4  ;;  %p1469_p10 = scmp.ne.s32.totalorder %s2197_s6, %s1468_s20  ;;  %s60_s16 = int_to_ptr.vmem [resolvable:$true] %s59_s16 }
  0x37   :  { %p1472_p11 = scmp.lt.u32.totalorder %s1468_s20, %s2197_s6 }
  0x39   :  { %p1474_p12 = pnand %p1472_p11, %p1469_p10 }
  0x3b   :  { %1477 = shalt.err (!%p1474_p12)
}
  0x3c   :  { %s1478_s26 = scalar_lea.vmem %s60_s16, 256  ;;  %p1483_p0 = scmp.lt.s32.totalorder %s60_s16, %s60_s16 }
  0x3d   :  { %p1479_p13 = scmp.ne.s32.totalorder %s60_s16, %s1478_s26  ;;  %p1484_p1 = scmp.lt.s32.totalorder %s1478_s26, %s1478_s26 }
  0x3f   :  { %p1485_p2 = por %p1484_p1, %p1483_p0 }
  0x41   :  { %p1486_p3 = pnand %p1485_p2, %p1479_p13 }
  0x43   :  { %1489 = shalt.err (!%p1486_p3)
}
  0x44   :  { %s1526_s4 = smov 128   ;;  %s1527_s18 = smov 8  }
  0x45   :  { %65 = dma.hbm_to_vmem [thread:$0]  %s2197_s6, 256, %s60_s16, [#allocation10], %s1526_s4, %s1526_s4, %s1527_s18  }
  0x46   :  { %1512 = dma.done.wait [#allocation4], 128  }
  0x47   :  { %1513 = vsyncadd [#allocation4], 4294967168 }
  0x48   :  { %1514 = dma.done.wait [#allocation7], 144  }
  0x49   :  { %1515 = vsyncadd [#allocation7], 4294967152 }
  0x4a   :  { %1516 = dma.done.wait [#allocation10], 256  }
  0x4b   :  { %1517 = vsyncadd [#allocation10], 4294967040  ;;  %v1528_v0 = vmov 0.0   ;;  %vm1529_vm0 = vmmov 0   ;;  %v1335_v1 = vld [vmem:[#allocation6] sm:$0xff]   ;;  %v79_v2 = vld [vmem:[#allocation3] sm:$0xff]  ;;  %v276_v29 = vlaneseq }
  0x4c   :  { %1244 = vmatprep.subr.bf16.mxu0 %v1528_v0  ;;  %1246 = vmatprep.mubr.msk.bf16.mxu0 %vm1529_vm0, %v1528_v0  ;;  %v80_v3 = vpack.c.bf16 %v79_v2, %v79_v2  ;;  %vm96_vm1 = vcmask 130048   ;;  %v1630_v4 = vld [vmem:[%s2196_s5] sm:$0xff]   ;;  %v1643_v5 = vld [vmem:[%s2196_s5 + $0x8] sm:$0xff]   ;;  %vm173_vm2 = vcmask 261120   ;;  %s1532_s10 = smov [#allocation11]  }
  0x4d   :  { %1250 = vmatprep.subr.bf16.mxu1 %v1528_v0  ;;  %1254 = vmatprep.mubr.msk.bf16.mxu1 %vm1529_vm0, %v1528_v0  ;;  %v1199_v6 = vld [vmem:[%s2193_s2] ss:$0 sm:$0xff]  ;;  %s1530_s2 = smov 112   ;;  %v277_v30 = vshrl.u32 %v276_v29, 7  ;;  %v158_v35 = vld [vmem:[#allocation9] sm:$0xff]  ;;  %v159_v40 = vld [vmem:[#allocation9 + $0x8] sm:$0xff] }
  0x4e   :  { %1245 = vmatpush3.bf16.msra.mxu0 %v1335_v1  ;;  %1251 = vmatpush3.bf16.msra.mxu1 %v1630_v4  ;;  %v1203_v17 = vld [vmem:[%s2194_s3] ss:$0 sm:$0xff]  ;;  %s1531_s3 = smov 16   ;;  %s1188_s11 = sshll.u32 %s1532_s10, 4  ;;  %s1189_s11 = int_to_ptr.vmem [resolvable:$true] %s1188_s11 }
  0x4f   :  { %1258 = vmatprep.subr.bf16.mxu0 %v1528_v0  ;;  %1252 = vmatprep.subr.bf16.mxu1 %v1528_v0  ;;  %v1670_v22 = vld [vmem:[#allocation8] ss:$0 sm:$0xff]  ;;  %v278_v31 = vsub.s32 1, %v277_v30  ;;  %v282_v32 = vsub.s32 0, %v277_v30  ;;  %v287_v33 = vsub.s32 3, %v277_v30  ;;  %v291_v34 = vsub.s32 2, %v277_v30  ;;  %p1495_p5 = scmp.lt.s32.totalorder %s1189_s11, %s1189_s11 }
  0x50   :  { %v296_v36 = vsub.s32 5, %v277_v30  ;;  %v300_v37 = vsub.s32 4, %v277_v30  ;;  %v305_v38 = vsub.s32 7, %v277_v30  ;;  %v309_v39 = vsub.s32 6, %v277_v30  ;;  %s1490_s12 = scalar_lea.vmem %s1189_s11, 128 }
  0x51   :  { %1247 = vmatmul.mubr.msk.bf16.vlgmr.msra.gmra.mrb[0].mxu0 %vm96_vm1, %v80_v3  ;;  %v1676_v41 = vrot.slane %v158_v35, %v278_v31  ;;  %v1678_v42 = vrot.slane %v158_v35, %v282_v32  ;;  %v1680_v43 = vrot.slane %v158_v35, %v287_v33  ;;  %v1682_v44 = vrot.slane %v158_v35, %v291_v34  ;;  %p1491_p4 = scmp.ne.s32.totalorder %s1189_s11, %s1490_s12  ;;  %p1496_p6 = scmp.lt.s32.totalorder %s1490_s12, %s1490_s12 }
  0x52   :  { %1259 = vmatpush3.bf16.msra.mxu0 %v1630_v4  ;;  %1262 = vmatprep.mubr.msk.bf16.mxu0 %vm1529_vm0, %v1528_v0  ;;  %v1684_v45 = vrot.slane %v158_v35, %v296_v36  ;;  %v1686_v46 = vrot.slane %v158_v35, %v300_v37  ;;  %v1688_v47 = vrot.slane %v158_v35, %v305_v38 }
  0x53   :  { %1260 = vmatprep.subr.bf16.mxu0 %v1528_v0  ;;  %1253 = vmatpush3.bf16.msra.mxu1 %v1643_v5  ;;  %v1690_v48 = vrot.slane %v158_v35, %v309_v39  ;;  %v1692_v49 = vrot.slane %v159_v40, %v278_v31  ;;  %v1694_v50 = vrot.slane %v159_v40, %v282_v32  ;;  %p1497_p7 = por %p1496_p6, %p1495_p5 }
  0x54   :  { %1266 = vmatprep.subr.bf16.mxu1 %v1528_v0  ;;  %v1696_v51 = vrot.slane %v159_v40, %v287_v33  ;;  %v1698_v52 = vrot.slane %v159_v40, %v291_v34  ;;  %v1700_v53 = vrot.slane %v159_v40, %v296_v36  ;;  %v1702_v54 = vrot.slane %v159_v40, %v300_v37 }
  0x55   :  { %v1704_v55 = vrot.slane %v159_v40, %v305_v38  ;;  %v1706_v56 = vrot.slane %v159_v40, %v309_v39  ;;  %p1498_p8 = pnand %p1497_p7, %p1491_p4 }
  0x56   :  { %1261 = vmatpush3.bf16.msra.mxu0 %v1643_v5 }
  0x57   :  { %1274 = vmatprep.subr.bf16.mxu0 %v1528_v0 }
 0x124   :  { %v134_v7 = vpop.f32.mrb[0].mxu0 }
 0x125   :  { %v135_v8 = vadd.f32 %v1199_v6, %v134_v7  ;;  %v1248_v9 = vpop.f32.mrb[1].mxu0 }
 0x126   :  { %v137_v10 = vpop.f32.mrb[2].mxu0 }
 0x127   :  { %v160_v11 = vpack.c.bf16 %v135_v8, %v135_v8  ;;  %v1249_v12 = vpop.f32.mrb[3].mxu0 }
 0x129   :  { %1255 = vmatmul.mubr.msk.bf16.vlgmr.msra.gmra.mrb[0].mxu1 %vm173_vm2, %v160_v11 }
 0x12a   :  { %1267 = vmatpush3.bf16.msra.mxu1 %v1630_v4  ;;  %1270 = vmatprep.mubr.msk.bf16.mxu1 %vm1529_vm0, %v1528_v0 }
 0x12b   :  { %1268 = vmatprep.subr.bf16.mxu1 %v1528_v0 }
 0x12e   :  { %1269 = vmatpush3.bf16.msra.mxu1 %v1643_v5 }
 0x12f   :  { %1282 = vmatprep.subr.bf16.mxu1 %v1528_v0 }
 0x1fc   :  { %v211_v13 = vpop.f32.mrb[0].mxu1 }
 0x1fd   :  { %218 = vrot.lane.b32.xlu0 %v211_v13, %s1530_s2  ;;  %v1256_v14 = vpop.f32.mrb[1].mxu1 }
 0x1fe   :  { %v214_v15 = vpop.f32.mrb[2].mxu1 }
 0x1ff   :  { %v1257_v16 = vpop.f32.mrb[3].mxu1 }
 0x26f   :  { %v219_v18 = vpop.permute.xlu0 %218 }
 0x270   :  { %v221_v19 = vadd.f32 %v1203_v17, %v219_v18 }
 0x272   :  { %1338 = vtanh.f32 %v221_v19 }
 0x27c   :  { %v1339_v20 = vpop.eup %1338 }
 0x27d   :  { %v223_v21 = vpack.c.bf16 %v1339_v20, %v1339_v20 }
 0x27f   :  { %1263 = vmatmul.mubr.msk.bf16.vlgmr.msra.gmra.mrb[4].mxu0 %vm173_vm2, %v223_v21 }
 0x280   :  { %1275 = vmatpush3.bf16.msra.mxu0 %v1630_v4  ;;  %1278 = vmatprep.mubr.msk.bf16.mxu0 %vm1529_vm0, %v1528_v0 }
 0x281   :  { %1276 = vmatprep.subr.bf16.mxu0 %v1528_v0 }
 0x284   :  { %1277 = vmatpush3.bf16.msra.mxu0 %v1643_v5 }
 0x285   :  { %1290 = vmatprep.subr.bf16.mxu0 %v1528_v0 }
 0x352   :  { %v261_v23 = vpop.f32.mrb[4].mxu0 }
 0x353   :  { %v267_v24 = vadd.f32 %v1670_v22, %v261_v23  ;;  %371 = vrot.lane.b32.xlu1 %v261_v23, %s1530_s2  ;;  %v1264_v25 = vpop.f32.mrb[5].mxu0 }
 0x354   :  { %v264_v26 = vpop.f32.mrb[6].mxu0 }
 0x355   :  { %271 = vst.msk [vmem:[#allocation2] sm:$0xff] %vm96_vm1, %v267_v24  ;;  %v1265_v27 = vpop.f32.mrb[7].mxu0  ;;  %v268_v28 = vsel %vm96_vm1, %v267_v24, -inf }
 0x356   :  { %269 = vmax.index.xlane.f32.xlu0 %v268_v28 }
 0x3c5   :  { %v372_v19 = vpop.permute.xlu1 %371 }
 0x3e3   :  { %v1708_v57 = vpop.xlane.xlu0 %269 }
 0x3e4   :  { %v272_v58 = vand.u32 1, %v1708_v57  ;;  %v348_v59 = vshra.s32 %v1708_v57, 1  ;;  %v357_v60 = vshra.s32 %v1708_v57, 2  ;;  %v364_v61 = vshra.s32 %v1708_v57, 3 }
 0x3e6   :  { %vm1714_vm3 = vcmp.eq.s32.totalorder %v272_v58, 1  ;;  %v349_v63 = vand.u32 1, %v348_v59  ;;  %v358_v1 = vand.u32 1, %v357_v60  ;;  %v365_v2 = vand.u32 1, %v364_v61 }
 0x3e7   :  { %v284_v3 = vsel %vm1714_vm3, %v1676_v41, %v1678_v42  ;;  %v293_v6 = vsel %vm1714_vm3, %v1680_v43, %v1682_v44  ;;  %v302_v7 = vsel %vm1714_vm3, %v1684_v45, %v1686_v46  ;;  %v311_v8 = vsel %vm1714_vm3, %v1688_v47, %v1690_v48 }
 0x3e8   :  { %v320_v9 = vsel %vm1714_vm3, %v1692_v49, %v1694_v50  ;;  %v329_v10 = vsel %vm1714_vm3, %v1696_v51, %v1698_v52  ;;  %v338_v11 = vsel %vm1714_vm3, %v1700_v53, %v1702_v54  ;;  %v347_v12 = vsel %vm1714_vm3, %v1704_v55, %v1706_v56 }
 0x3e9   :  { %vm350_vm4 = vcmp.eq.s32.totalorder %v349_v63, 1  ;;  %vm359_vm5 = vcmp.eq.s32.totalorder %v358_v1, 1  ;;  %vm366_vm6 = vcmp.eq.s32.totalorder %v365_v2, 1 }
 0x3ea   :  { %v353_v13 = vsel %vm350_vm4, %v293_v6, %v284_v3  ;;  %v354_v14 = vsel %vm350_vm4, %v311_v8, %v302_v7  ;;  %v355_v15 = vsel %vm350_vm4, %v329_v10, %v320_v9  ;;  %v356_v16 = vsel %vm350_vm4, %v347_v12, %v338_v11 }
 0x3eb   :  { %v362_v17 = vsel %vm359_vm5, %v354_v14, %v353_v13  ;;  %v363_v18 = vsel %vm359_vm5, %v356_v16, %v355_v15 }
 0x3ec   :  { %v369_v20 = vsel %vm366_vm6, %v363_v18, %v362_v17 }
 0x3ed   :  { %v374_v21 = vadd.f32 %v372_v19, %v369_v20 }
 0x3ef   :  { %1340 = vtanh.f32 %v374_v21 }
 0x3f9   :  { %v1341_v23 = vpop.eup %1340 }
 0x3fa   :  { %v376_v24 = vpack.c.bf16 %v1341_v23, %v1341_v23 }
 0x3fc   :  { %1271 = vmatmul.mubr.msk.bf16.vlgmr.msra.gmra.mrb[4].mxu1 %vm173_vm2, %v376_v24 }
 0x3fd   :  { %1283 = vmatpush3.bf16.msra.mxu1 %v1630_v4  ;;  %1286 = vmatprep.mubr.msk.bf16.mxu1 %vm1529_vm0, %v1528_v0 }
 0x3fe   :  { %1284 = vmatprep.subr.bf16.mxu1 %v1528_v0 }
 0x401   :  { %1285 = vmatpush3.bf16.msra.mxu1 %v1643_v5 }
 0x402   :  { %1298 = vmatprep.subr.bf16.mxu1 %v1528_v0 }
 0x4cf   :  { %v414_v25 = vpop.f32.mrb[4].mxu1 }
 0x4d0   :  { %v420_v26 = vadd.f32 %v1670_v22, %v414_v25  ;;  %460 = vrot.lane.b32.xlu0 %v414_v25, %s1530_s2  ;;  %v1272_v27 = vpop.f32.mrb[5].mxu1 }
 0x4d1   :  { %v417_v28 = vpop.f32.mrb[6].mxu1 }
 0x4d2   :  { %424 = vst.msk [vmem:[#allocation2 + $0x8] sm:$0xff] %vm96_vm1, %v420_v26  ;;  %v1273_v29 = vpop.f32.mrb[7].mxu1  ;;  %v421_v30 = vsel %vm96_vm1, %v420_v26, -inf }
 0x4d3   :  { %422 = vmax.index.xlane.f32.xlu1 %v421_v30 }
 0x542   :  { %v461_v10 = vpop.permute.xlu0 %460 }
 0x560   :  { %v1761_v31 = vpop.xlane.xlu1 %422 }
 0x561   :  { %v425_v32 = vand.u32 1, %v1761_v31  ;;  %v437_v33 = vshra.s32 %v1761_v31, 1  ;;  %v446_v34 = vshra.s32 %v1761_v31, 2  ;;  %v453_v35 = vshra.s32 %v1761_v31, 3 }
 0x563   :  { %vm1767_vm7 = vcmp.eq.s32.totalorder %v425_v32, 1  ;;  %v438_v37 = vand.u32 1, %v437_v33  ;;  %v447_v38 = vand.u32 1, %v446_v34  ;;  %v454_v39 = vand.u32 1, %v453_v35 }
 0x564   :  { %v429_v40 = vsel %vm1767_vm7, %v1676_v41, %v1678_v42  ;;  %v430_v58 = vsel %vm1767_vm7, %v1680_v43, %v1682_v44  ;;  %v431_v59 = vsel %vm1767_vm7, %v1684_v45, %v1686_v46  ;;  %v432_v60 = vsel %vm1767_vm7, %v1688_v47, %v1690_v48 }
 0x565   :  { %v433_v61 = vsel %vm1767_vm7, %v1692_v49, %v1694_v50  ;;  %v434_v62 = vsel %vm1767_vm7, %v1696_v51, %v1698_v52  ;;  %v435_v63 = vsel %vm1767_vm7, %v1700_v53, %v1702_v54  ;;  %v436_v1 = vsel %vm1767_vm7, %v1704_v55, %v1706_v56 }
 0x566   :  { %vm439_vm8 = vcmp.eq.s32.totalorder %v438_v37, 1  ;;  %vm448_vm9 = vcmp.eq.s32.totalorder %v447_v38, 1  ;;  %vm455_vm10 = vcmp.eq.s32.totalorder %v454_v39, 1 }
 0x567   :  { %v442_v2 = vsel %vm439_vm8, %v430_v58, %v429_v40  ;;  %v443_v3 = vsel %vm439_vm8, %v432_v60, %v431_v59  ;;  %v444_v6 = vsel %vm439_vm8, %v434_v62, %v433_v61  ;;  %v445_v7 = vsel %vm439_vm8, %v436_v1, %v435_v63 }
 0x568   :  { %v451_v8 = vsel %vm448_vm9, %v443_v3, %v442_v2  ;;  %v452_v9 = vsel %vm448_vm9, %v445_v7, %v444_v6 }
 0x569   :  { %v458_v11 = vsel %vm455_vm10, %v452_v9, %v451_v8  ;;  %vm1137_vm10 = vcmask 15360  }
 0x56a   :  { %v463_v12 = vadd.f32 %v461_v10, %v458_v11 }
 0x56c   :  { %1342 = vtanh.f32 %v463_v12 }
 0x576   :  { %v1343_v13 = vpop.eup %1342 }
 0x577   :  { %v465_v14 = vpack.c.bf16 %v1343_v13, %v1343_v13 }
 0x579   :  { %1279 = vmatmul.mubr.msk.bf16.vlgmr.msra.gmra.mrb[8].mxu0 %vm173_vm2, %v465_v14 }
 0x57a   :  { %1291 = vmatpush3.bf16.msra.mxu0 %v1630_v4  ;;  %1294 = vmatprep.mubr.msk.bf16.mxu0 %vm1529_vm0, %v1528_v0 }
 0x57b   :  { %1292 = vmatprep.subr.bf16.mxu0 %v1528_v0 }
 0x57e   :  { %1293 = vmatpush3.bf16.msra.mxu0 %v1643_v5 }
 0x57f   :  { %1306 = vmatprep.subr.bf16.mxu0 %v1528_v0 }
 0x64c   :  { %v503_v15 = vpop.f32.mrb[8].mxu0 }
 0x64d   :  { %v509_v16 = vadd.f32 %v1670_v22, %v503_v15  ;;  %v1280_v17 = vpop.f32.mrb[9].mxu0 }
 0x64e   :  { %v506_v18 = vpop.f32.mrb[10].mxu0 }
 0x64f   :  { %513 = vst.msk [vmem:[#allocation2 + $0x10] sm:$0xff] %vm96_vm1, %v509_v16  ;;  %v1281_v19 = vpop.f32.mrb[11].mxu0  ;;  %v510_v20 = vsel %vm96_vm1, %v509_v16, -inf }
 0x650   :  { %511 = vmax.index.xlane.f32.xlu1 %v510_v20 }
 0x661   :  { %549 = vrot.lane.b32.xlu1 %v503_v15, %s1530_s2 }
 0x6dd   :  { %v1814_v21 = vpop.xlane.xlu1 %511 }
 0x6de   :  { %v514_v23 = vand.u32 1, %v1814_v21  ;;  %v526_v24 = vshra.s32 %v1814_v21, 1  ;;  %v535_v25 = vshra.s32 %v1814_v21, 2  ;;  %v542_v29 = vshra.s32 %v1814_v21, 3 }
 0x6e0   :  { %vm1819_vm11 = vcmp.eq.s32.totalorder %v514_v23, 1  ;;  %v527_v27 = vand.u32 1, %v526_v24  ;;  %v536_v28 = vand.u32 1, %v535_v25  ;;  %v543_v60 = vand.u32 1, %v542_v29 }
 0x6e1   :  { %v518_v30 = vsel %vm1819_vm11, %v1676_v41, %v1678_v42  ;;  %v519_v32 = vsel %vm1819_vm11, %v1680_v43, %v1682_v44  ;;  %v520_v33 = vsel %vm1819_vm11, %v1684_v45, %v1686_v46  ;;  %v521_v34 = vsel %vm1819_vm11, %v1688_v47, %v1690_v48  ;;  %v550_v1 = vpop.permute.xlu1 %549 }
 0x6e2   :  { %vm528_vm12 = vcmp.eq.s32.totalorder %v527_v27, 1  ;;  %v522_v35 = vsel %vm1819_vm11, %v1692_v49, %v1694_v50  ;;  %v523_v36 = vsel %vm1819_vm11, %v1696_v51, %v1698_v52  ;;  %v524_v37 = vsel %vm1819_vm11, %v1700_v53, %v1702_v54 }
 0x6e3   :  { %v525_v38 = vsel %vm1819_vm11, %v1704_v55, %v1706_v56  ;;  %v531_v39 = vsel %vm528_vm12, %v519_v32, %v518_v30  ;;  %v532_v40 = vsel %vm528_vm12, %v521_v34, %v520_v33  ;;  %v533_v58 = vsel %vm528_vm12, %v523_v36, %v522_v35 }
 0x6e4   :  { %v534_v59 = vsel %vm528_vm12, %v525_v38, %v524_v37  ;;  %vm537_vm13 = vcmp.eq.s32.totalorder %v536_v28, 1  ;;  %vm544_vm14 = vcmp.eq.s32.totalorder %v543_v60, 1  ;;  %vm1139_vm11 = vcmask 23552  }
 0x6e5   :  { %v540_v61 = vsel %vm537_vm13, %v532_v40, %v531_v39  ;;  %v541_v62 = vsel %vm537_vm13, %v534_v59, %v533_v58  ;;  %vm1141_vm12 = vcmask 31744   ;;  %vm1143_vm13 = vcmask 39936  }
 0x6e6   :  { %v547_v63 = vsel %vm544_vm14, %v541_v62, %v540_v61 }
 0x6e7   :  { %v552_v2 = vadd.f32 %v550_v1, %v547_v63 }
 0x6e9   :  { %1344 = vtanh.f32 %v552_v2 }
 0x6f3   :  { %v1345_v3 = vpop.eup %1344 }
 0x6f4   :  { %v554_v6 = vpack.c.bf16 %v1345_v3, %v1345_v3 }
 0x6f6   :  { %1287 = vmatmul.mubr.msk.bf16.vlgmr.msra.gmra.mrb[8].mxu1 %vm173_vm2, %v554_v6 }
 0x6f7   :  { %1299 = vmatpush3.bf16.msra.mxu1 %v1630_v4  ;;  %1302 = vmatprep.mubr.msk.bf16.mxu1 %vm1529_vm0, %v1528_v0 }
 0x6f8   :  { %1300 = vmatprep.subr.bf16.mxu1 %v1528_v0 }
 0x6fb   :  { %1301 = vmatpush3.bf16.msra.mxu1 %v1643_v5 }
 0x6fc   :  { %1314 = vmatprep.subr.bf16.mxu1 %v1528_v0 }
 0x7c9   :  { %v592_v7 = vpop.f32.mrb[8].mxu1 }
 0x7ca   :  { %v598_v8 = vadd.f32 %v1670_v22, %v592_v7  ;;  %638 = vrot.lane.b32.xlu1 %v592_v7, %s1530_s2  ;;  %v1288_v9 = vpop.f32.mrb[9].mxu1 }
 0x7cb   :  { %v595_v10 = vpop.f32.mrb[10].mxu1 }
 0x7cc   :  { %602 = vst.msk [vmem:[#allocation2 + $0x18] sm:$0xff] %vm96_vm1, %v598_v8  ;;  %v1289_v11 = vpop.f32.mrb[11].mxu1  ;;  %v599_v12 = vsel %vm96_vm1, %v598_v8, -inf }
 0x7cd   :  { %600 = vmax.index.xlane.f32.xlu0 %v599_v12 }
 0x83c   :  { %v639_v39 = vpop.permute.xlu1 %638 }
 0x85a   :  { %v1867_v13 = vpop.xlane.xlu0 %600 }
 0x85b   :  { %v603_v14 = vand.u32 1, %v1867_v13  ;;  %v615_v15 = vshra.s32 %v1867_v13, 1  ;;  %v624_v16 = vshra.s32 %v1867_v13, 2  ;;  %v631_v17 = vshra.s32 %v1867_v13, 3 }
 0x85d   :  { %vm1873_vm15 = vcmp.eq.s32.totalorder %v603_v14, 1  ;;  %v616_v19 = vand.u32 1, %v615_v15  ;;  %v625_v20 = vand.u32 1, %v624_v16  ;;  %v632_v23 = vand.u32 1, %v631_v17 }
 0x85e   :  { %v607_v24 = vsel %vm1873_vm15, %v1676_v41, %v1678_v42  ;;  %v608_v25 = vsel %vm1873_vm15, %v1680_v43, %v1682_v44  ;;  %v609_v26 = vsel %vm1873_vm15, %v1684_v45, %v1686_v46  ;;  %v610_v27 = vsel %vm1873_vm15, %v1688_v47, %v1690_v48 }
 0x85f   :  { %v611_v28 = vsel %vm1873_vm15, %v1692_v49, %v1694_v50  ;;  %v612_v29 = vsel %vm1873_vm15, %v1696_v51, %v1698_v52  ;;  %v613_v30 = vsel %vm1873_vm15, %v1700_v53, %v1702_v54  ;;  %v614_v32 = vsel %vm1873_vm15, %v1704_v55, %v1706_v56 }
 0x860   :  { %vm617_vm3 = vcmp.eq.s32.totalorder %v616_v19, 1  ;;  %vm626_vm4 = vcmp.eq.s32.totalorder %v625_v20, 1  ;;  %vm633_vm5 = vcmp.eq.s32.totalorder %v632_v23, 1 }
 0x861   :  { %v620_v33 = vsel %vm617_vm3, %v608_v25, %v607_v24  ;;  %v621_v34 = vsel %vm617_vm3, %v610_v27, %v609_v26  ;;  %v622_v35 = vsel %vm617_vm3, %v612_v29, %v611_v28  ;;  %v623_v36 = vsel %vm617_vm3, %v614_v32, %v613_v30 }
 0x862   :  { %v629_v37 = vsel %vm626_vm4, %v621_v34, %v620_v33  ;;  %v630_v38 = vsel %vm626_vm4, %v623_v36, %v622_v35 }
 0x863   :  { %v636_v40 = vsel %vm633_vm5, %v630_v38, %v629_v37  ;;  %vm1145_vm5 = vcmask 48128  }
 0x864   :  { %v641_v58 = vadd.f32 %v639_v39, %v636_v40 }
 0x866   :  { %1346 = vtanh.f32 %v641_v58 }
 0x870   :  { %v1347_v59 = vpop.eup %1346 }
 0x871   :  { %v643_v60 = vpack.c.bf16 %v1347_v59, %v1347_v59 }
 0x873   :  { %1295 = vmatmul.mubr.msk.bf16.vlgmr.msra.gmra.mrb[12].mxu0 %vm173_vm2, %v643_v60 }
 0x874   :  { %1307 = vmatpush3.bf16.msra.mxu0 %v1630_v4  ;;  %1310 = vmatprep.mubr.msk.bf16.mxu0 %vm1529_vm0, %v1528_v0 }
 0x875   :  { %1308 = vmatprep.subr.bf16.mxu0 %v1528_v0 }
 0x878   :  { %1309 = vmatpush3.bf16.msra.mxu0 %v1643_v5 }
 0x946   :  { %v681_v61 = vpop.f32.mrb[12].mxu0 }
 0x947   :  { %v687_v62 = vadd.f32 %v1670_v22, %v681_v61  ;;  %727 = vrot.lane.b32.xlu0 %v681_v61, %s1530_s2  ;;  %v1296_v63 = vpop.f32.mrb[13].mxu0  ;;  %v1130_v61 = vcvt.s32.f32 %v1867_v13 }
 0x948   :  { %v684_v1 = vpop.f32.mrb[14].mxu0 }
 0x949   :  { %691 = vst.msk [vmem:[#allocation2 + $0x20] sm:$0xff] %vm96_vm1, %v687_v62  ;;  %v1297_v2 = vpop.f32.mrb[15].mxu0  ;;  %v688_v3 = vsel %vm96_vm1, %v687_v62, -inf }
 0x94a   :  { %689 = vmax.index.xlane.f32.xlu1 %v688_v3 }
 0x9b9   :  { %v728_v33 = vpop.permute.xlu0 %727 }
 0x9d7   :  { %v1919_v6 = vpop.xlane.xlu1 %689 }
 0x9d8   :  { %v692_v7 = vand.u32 1, %v1919_v6  ;;  %v704_v8 = vshra.s32 %v1919_v6, 1  ;;  %v713_v9 = vshra.s32 %v1919_v6, 2  ;;  %v720_v10 = vshra.s32 %v1919_v6, 3 }
 0x9d9   :  { %v1131_v63 = vcvt.s32.f32 %v1919_v6 }
 0x9da   :  { %vm1925_vm6 = vcmp.eq.s32.totalorder %v692_v7, 1  ;;  %v705_v12 = vand.u32 1, %v704_v8  ;;  %v714_v14 = vand.u32 1, %v713_v9  ;;  %v721_v15 = vand.u32 1, %v720_v10 }
 0x9db   :  { %v696_v16 = vsel %vm1925_vm6, %v1676_v41, %v1678_v42  ;;  %v697_v17 = vsel %vm1925_vm6, %v1680_v43, %v1682_v44  ;;  %v698_v18 = vsel %vm1925_vm6, %v1684_v45, %v1686_v46  ;;  %v699_v19 = vsel %vm1925_vm6, %v1688_v47, %v1690_v48 }
 0x9dc   :  { %v700_v20 = vsel %vm1925_vm6, %v1692_v49, %v1694_v50  ;;  %v701_v23 = vsel %vm1925_vm6, %v1696_v51, %v1698_v52  ;;  %v702_v24 = vsel %vm1925_vm6, %v1700_v53, %v1702_v54  ;;  %v703_v25 = vsel %vm1925_vm6, %v1704_v55, %v1706_v56 }
 0x9dd   :  { %vm706_vm7 = vcmp.eq.s32.totalorder %v705_v12, 1  ;;  %vm715_vm8 = vcmp.eq.s32.totalorder %v714_v14, 1  ;;  %vm722_vm9 = vcmp.eq.s32.totalorder %v721_v15, 1 }
 0x9de   :  { %v709_v26 = vsel %vm706_vm7, %v697_v17, %v696_v16  ;;  %v710_v27 = vsel %vm706_vm7, %v699_v19, %v698_v18  ;;  %v711_v28 = vsel %vm706_vm7, %v701_v23, %v700_v20  ;;  %v712_v29 = vsel %vm706_vm7, %v703_v25, %v702_v24 }
 0x9df   :  { %v718_v30 = vsel %vm715_vm8, %v710_v27, %v709_v26  ;;  %v719_v32 = vsel %vm715_vm8, %v712_v29, %v711_v28 }
 0x9e0   :  { %v725_v34 = vsel %vm722_vm9, %v719_v32, %v718_v30 }
 0x9e1   :  { %v730_v35 = vadd.f32 %v728_v33, %v725_v34 }
 0x9e3   :  { %1348 = vtanh.f32 %v730_v35 }
 0x9ed   :  { %v1349_v36 = vpop.eup %1348 }
 0x9ee   :  { %v732_v37 = vpack.c.bf16 %v1349_v36, %v1349_v36 }
 0x9f0   :  { %1303 = vmatmul.mubr.msk.bf16.vlgmr.msra.gmra.mrb[12].mxu1 %vm173_vm2, %v732_v37 }
 0x9f1   :  { %1315 = vmatpush3.bf16.msra.mxu1 %v1630_v4  ;;  %1318 = vmatprep.mubr.msk.bf16.mxu1 %vm1529_vm0, %v1528_v0  ;;  %v1128_v4 = vcvt.s32.f32 %v1761_v31  ;;  %vm1135_vm0 = vcmask 7168  }
 0x9f2   :  { %1316 = vmatprep.subr.bf16.mxu1 %v1528_v0  ;;  %v1129_v0 = vcvt.s32.f32 %v1814_v21 }
 0x9f5   :  { %1317 = vmatpush3.bf16.msra.mxu1 %v1643_v5  ;;  %v1127_v5 = vcvt.s32.f32 %v1708_v57 }
 0x9f7   :  { %v1136_v62 = vsel %vm1135_vm0, %v1127_v5, %v1128_v4  ;;  %v961_v4 = vld [vmem:[#allocation2 + $0x10] sm:$0xff]  ;;  %v2029_v5 = vld [vmem:[#allocation2 + $0x18] sm:$0xff] }
 0x9f8   :  { %v1138_v1 = vsel %vm1137_vm10, %v1136_v62, %v1129_v0  ;;  %v973_v0 = vsel %vm96_vm1, %v961_v4, -inf  ;;  %v963_v62 = vld [vmem:[#allocation2 + $0x20] sm:$0xff] }
 0x9f9   :  { %v1140_v2 = vsel %vm1139_vm11, %v1138_v1, %v1130_v61  ;;  %v976_v61 = vsel %vm96_vm1, %v2029_v5, -inf }
 0x9fa   :  { %v1142_v9 = vsel %vm1141_vm12, %v1140_v2, %v1131_v63  ;;  %v979_v63 = vsel %vm96_vm1, %v963_v62, -inf }
 0xac3   :  { %v770_v38 = vpop.f32.mrb[12].mxu1 }
 0xac4   :  { %v776_v39 = vadd.f32 %v1670_v22, %v770_v38  ;;  %v1304_v40 = vpop.f32.mrb[13].mxu1 }
 0xac5   :  { %v773_v58 = vpop.f32.mrb[14].mxu1 }
 0xac6   :  { %780 = vst.msk [vmem:[#allocation2 + $0x28] sm:$0xff] %vm96_vm1, %v776_v39  ;;  %v1305_v59 = vpop.f32.mrb[15].mxu1  ;;  %v777_v60 = vsel %vm96_vm1, %v776_v39, -inf }
 0xac7   :  { %778 = vmax.index.xlane.f32.xlu1 %v777_v60  ;;  %v2024_v59 = vld [vmem:[#allocation2 + $0x8] sm:$0xff] }
 0xac8   :  { %v970_v60 = vsel %vm96_vm1, %v2024_v59, -inf }
 0xacd   :  { %v2034_v1 = vld [vmem:[#allocation2 + $0x28] sm:$0xff] }
 0xace   :  { %v982_v2 = vsel %vm96_vm1, %v2034_v1, -inf }
 0xad8   :  { %816 = vrot.lane.b32.xlu1 %v770_v38, %s1530_s2 }
 0xb54   :  { %v779_v3 = vpop.xlane.xlu1 %778 }
 0xb55   :  { %v781_v31 = vand.u32 1, %v779_v3  ;;  %v793_v7 = vshra.s32 %v779_v3, 1  ;;  %v1132_v21 = vcvt.s32.f32 %v779_v3  ;;  %v802_v8 = vshra.s32 %v779_v3, 2 }
 0xb56   :  { %v809_v57 = vshra.s32 %v779_v3, 3 }
 0xb57   :  { %vm1980_vm14 = vcmp.eq.s32.totalorder %v781_v31, 1  ;;  %v794_v10 = vand.u32 1, %v793_v7  ;;  %v803_v6 = vand.u32 1, %v802_v8  ;;  %v1985_v11 = vsel %vm1143_vm13, %v1142_v9, %v1132_v21  ;;  %v959_v7 = vld [vmem:[#allocation2] sm:$0xff] }
 0xb58   :  { %v785_v12 = vsel %vm1980_vm14, %v1676_v41, %v1678_v42  ;;  %v786_v14 = vsel %vm1980_vm14, %v1680_v43, %v1682_v44  ;;  %v787_v15 = vsel %vm1980_vm14, %v1684_v45, %v1686_v46  ;;  %v788_v16 = vsel %vm1980_vm14, %v1688_v47, %v1690_v48  ;;  %v817_v32 = vpop.permute.xlu1 %816 }
 0xb59   :  { %vm795_vm15 = vcmp.eq.s32.totalorder %v794_v10, 1  ;;  %v789_v17 = vsel %vm1980_vm14, %v1692_v49, %v1694_v50  ;;  %v790_v18 = vsel %vm1980_vm14, %v1696_v51, %v1698_v52  ;;  %v791_v19 = vsel %vm1980_vm14, %v1700_v53, %v1702_v54 }
 0xb5a   :  { %v792_v20 = vsel %vm1980_vm14, %v1704_v55, %v1706_v56  ;;  %v798_v23 = vsel %vm795_vm15, %v786_v14, %v785_v12  ;;  %v799_v24 = vsel %vm795_vm15, %v788_v16, %v787_v15  ;;  %v800_v25 = vsel %vm795_vm15, %v790_v18, %v789_v17 }
 0xb5b   :  { %v801_v26 = vsel %vm795_vm15, %v792_v20, %v791_v19  ;;  %vm804_vm3 = vcmp.eq.s32.totalorder %v803_v6, 1  ;;  %v810_v27 = vand.u32 1, %v809_v57  ;;  %v967_v21 = vsel %vm96_vm1, %v959_v7, -inf }
 0xb5c   :  { %v807_v28 = vsel %vm804_vm3, %v799_v24, %v798_v23  ;;  %v808_v29 = vsel %vm804_vm3, %v801_v26, %v800_v25  ;;  %vm1149_vm14 = vcmask 64512   ;;  %vm1151_vm15 = vcmask 72704  }
 0xb5d   :  { %vm811_vm4 = vcmp.eq.s32.totalorder %v810_v27, 1  ;;  %vm1153_vm3 = vcmask 80896  }
 0xb5e   :  { %v814_v30 = vsel %vm811_vm4, %v808_v29, %v807_v28  ;;  %vm1155_vm4 = vcmask 89088  }
 0xb5f   :  { %v819_v33 = vadd.f32 %v817_v32, %v814_v30 }
 0xb61   :  { %1350 = vtanh.f32 %v819_v33 }
 0xb6b   :  { %v1351_v34 = vpop.eup %1350 }
 0xb6c   :  { %v821_v35 = vpack.c.bf16 %v1351_v34, %v1351_v34 }
 0xb6e   :  { %1311 = vmatmul.mubr.msk.bf16.vlgmr.msra.gmra.mrb[16].mxu0 %vm173_vm2, %v821_v35 }
 0xc41   :  { %v859_v36 = vpop.f32.mrb[16].mxu0 }
 0xc42   :  { %v865_v37 = vadd.f32 %v1670_v22, %v859_v36  ;;  %905 = vrot.lane.b32.xlu1 %v859_v36, %s1530_s2  ;;  %v1312_v38 = vpop.f32.mrb[17].mxu0 }
 0xc43   :  { %v862_v39 = vpop.f32.mrb[18].mxu0 }
 0xc44   :  { %869 = vst.msk [vmem:[#allocation2 + $0x30] sm:$0xff] %vm96_vm1, %v865_v37  ;;  %v1313_v40 = vpop.f32.mrb[19].mxu0  ;;  %v866_v58 = vsel %vm96_vm1, %v865_v37, -inf }
 0xc45   :  { %867 = vmax.index.xlane.f32.xlu0 %v866_v58 }
 0xc49   :  { %971 = vmax.xlane.f32.xlu0 %v970_v60 }
 0xc4b   :  { %v965_v3 = vld [vmem:[#allocation2 + $0x30] sm:$0xff] }
 0xc4c   :  { %v985_v31 = vsel %vm96_vm1, %v965_v3, -inf }
 0xc4d   :  { %974 = vmax.xlane.f32.xlu0 %v973_v0 }
 0xc51   :  { %977 = vmax.xlane.f32.xlu0 %v976_v61 }
 0xc55   :  { %980 = vmax.xlane.f32.xlu0 %v979_v63 }
 0xc59   :  { %983 = vmax.xlane.f32.xlu0 %v982_v2 }
 0xc5d   :  { %986 = vmax.xlane.f32.xlu0 %v985_v31 }
 0xc66   :  { %968 = vmax.xlane.f32.xlu1 %v967_v21 }
 0xcd2   :  { %v868_v8 = vpop.xlane.xlu0 %867 }
 0xcd3   :  { %v870_v57 = vand.u32 1, %v868_v8  ;;  %v882_v9 = vshra.s32 %v868_v8, 1  ;;  %v891_v13 = vshra.s32 %v868_v8, 2  ;;  %v898_v10 = vshra.s32 %v868_v8, 3 }
 0xcd4   :  { %v1133_v6 = vcvt.s32.f32 %v868_v8 }
 0xcd5   :  { %vm2040_vm6 = vcmp.eq.s32.totalorder %v870_v57, 1  ;;  %v883_v14 = vand.u32 1, %v882_v9  ;;  %v892_v15 = vand.u32 1, %v891_v13  ;;  %v899_v16 = vand.u32 1, %v898_v10 }
 0xcd6   :  { %v874_v17 = vsel %vm2040_vm6, %v1676_v41, %v1678_v42  ;;  %v875_v18 = vsel %vm2040_vm6, %v1680_v43, %v1682_v44  ;;  %v876_v19 = vsel %vm2040_vm6, %v1684_v45, %v1686_v46  ;;  %v877_v20 = vsel %vm2040_vm6, %v1688_v47, %v1690_v48 }
 0xcd7   :  { %v878_v41 = vsel %vm2040_vm6, %v1692_v49, %v1694_v50  ;;  %v879_v42 = vsel %vm2040_vm6, %v1696_v51, %v1698_v52  ;;  %v880_v43 = vsel %vm2040_vm6, %v1700_v53, %v1702_v54  ;;  %v881_v44 = vsel %vm2040_vm6, %v1704_v55, %v1706_v56  ;;  %v2076_v49 = vpop.xlane.xlu0 %971  ;;  %v906_v53 = vpop.permute.xlu1 %905 }
 0xcd8   :  { %vm884_vm7 = vcmp.eq.s32.totalorder %v883_v14, 1  ;;  %vm893_vm8 = vcmp.eq.s32.totalorder %v892_v15, 1  ;;  %vm900_vm9 = vcmp.eq.s32.totalorder %v899_v16, 1  ;;  %v2080_v52 = vsel %vm1145_vm5, %v1985_v11, %v1133_v6 }
 0xcd9   :  { %v887_v45 = vsel %vm884_vm7, %v875_v18, %v874_v17  ;;  %v888_v46 = vsel %vm884_vm7, %v877_v20, %v876_v19  ;;  %v889_v47 = vsel %vm884_vm7, %v879_v42, %v878_v41  ;;  %v890_v48 = vsel %vm884_vm7, %v881_v44, %v880_v43 }
 0xcda   :  { %v896_v50 = vsel %vm893_vm8, %v888_v46, %v887_v45  ;;  %v897_v51 = vsel %vm893_vm8, %v890_v48, %v889_v47  ;;  %vm1157_vm6 = vcmask 97280   ;;  %vm1159_vm7 = vcmask 105472  }
 0xcdb   :  { %v903_v54 = vsel %vm900_vm9, %v897_v51, %v896_v50  ;;  %v975_v55 = vpop.xlane.xlu0 %974  ;;  %vm1161_vm8 = vcmask 113664   ;;  %vm1163_vm9 = vcmask 121856  }
 0xcdc   :  { %v908_v23 = vadd.f32 %v906_v53, %v903_v54  ;;  %v993_v28 = vsub.f32 %v961_v4, %v975_v55  ;;  %v2109_v54 = vsub.f32 %v2024_v59, %v2076_v49 }
 0xcde   :  { %1352 = vtanh.f32 %v908_v23  ;;  %v1003_v32 = vmul.f32 1.442695, %v993_v28  ;;  %v1001_v23 = vmul.f32 1.442695, %v2109_v54 }
 0xcdf   :  { %v2082_v56 = vpop.xlane.xlu0 %977 }
 0xce0   :  { %v2114_v55 = vsub.f32 %v2029_v5, %v2082_v56 }
 0xce3   :  { %v981_v26 = vpop.xlane.xlu0 %980 }
 0xce4   :  { %v995_v11 = vsub.f32 %v963_v62, %v981_v26 }
 0xce6   :  { %v1007_v35 = vmul.f32 1.442695, %v995_v11 }
 0xce7   :  { %v2085_v27 = vpop.xlane.xlu0 %983 }
 0xce8   :  { %v1353_v24 = vpop.eup %1352 }
 0xce9   :  { %v910_v25 = vpack.c.bf16 %v1353_v24, %v1353_v24 }
 0xceb   :  { %1319 = vmatmul.mubr.msk.bf16.vlgmr.msra.gmra.mrb[16].mxu1 %vm173_vm2, %v910_v25  ;;  %v987_v34 = vpop.xlane.xlu0 %986  ;;  %vm1147_vm2 = vcmask 56320  }
 0xcec   :  { %v997_v36 = vsub.f32 %v965_v3, %v987_v34 }
 0xcee   :  { %v1011_v37 = vmul.f32 1.442695, %v997_v36 }
 0xcf3   :  { %v969_v29 = vpop.xlane.xlu1 %968 }
 0xcf4   :  { %v991_v30 = vsub.f32 %v959_v7, %v969_v29  ;;  %v2120_v29 = vsub.f32 %v2034_v1, %v2085_v27 }
 0xcf6   :  { %v999_v33 = vmul.f32 1.442695, %v991_v30  ;;  %v1009_v5 = vmul.f32 1.442695, %v2120_v29 }
 0xcf8   :  { %1354 = vpow2.f32 %v999_v33 }
 0xcf9   :  { %1356 = vpow2.f32 %v1003_v32 }
 0xcfa   :  { %1358 = vpow2.f32 %v1007_v35 }
 0xcfb   :  { %1360 = vpow2.f32 %v1011_v37 }
 0xd02   :  { %v1355_v38 = vpop.eup %1354 }
 0xd03   :  { %v1015_v39 = vsel %vm96_vm1, %v1355_v38, 0.0  ;;  %v1357_v40 = vpop.eup %1356 }
 0xd04   :  { %1016 = vadd.xlane.f32.xlu0 %v1015_v39  ;;  %v1021_v58 = vsel %vm96_vm1, %v1357_v40, 0.0  ;;  %v1359_v60 = vpop.eup %1358 }
 0xd05   :  { %v1027_v4 = vsel %vm96_vm1, %v1359_v60, 0.0  ;;  %v1361_v0 = vpop.eup %1360 }
 0xd06   :  { %v1033_v61 = vsel %vm96_vm1, %v1361_v0, 0.0 }
 0xd08   :  { %1022 = vadd.xlane.f32.xlu0 %v1021_v58 }
 0xd0c   :  { %1028 = vadd.xlane.f32.xlu0 %v1027_v4 }
 0xd10   :  { %1034 = vadd.xlane.f32.xlu0 %v1033_v61 }
 0xd91   :  { %v1017_v62 = vpop.xlane.xlu0 %1016 }
 0xd92   :  { %1362 = vlog2.f32 %v1017_v62 }
 0xd93   :  { %1364 = vrcp.f32 %v1017_v62 }
 0xd95   :  { %v1023_v63 = vpop.xlane.xlu0 %1022 }
 0xd96   :  { %1366 = vlog2.f32 %v1023_v63 }
 0xd97   :  { %1368 = vrcp.f32 %v1023_v63 }
 0xd99   :  { %v1029_v2 = vpop.xlane.xlu0 %1028 }
 0xd9a   :  { %1370 = vlog2.f32 %v1029_v2 }
 0xd9b   :  { %1372 = vrcp.f32 %v1029_v2 }
 0xd9c   :  { %v1363_v3 = vpop.eup %1362 }
 0xd9d   :  { %v1365_v31 = vpop.eup %1364  ;;  %v2091_v7 = vmul.f32 0.6931472, %v1363_v3  ;;  %v1035_v21 = vpop.xlane.xlu0 %1034 }
 0xd9e   :  { %1374 = vlog2.f32 %v1035_v21  ;;  %v1079_v57 = vmul.f32 %v1365_v31, %v1355_v38 }
 0xd9f   :  { %1376 = vrcp.f32 %v1035_v21  ;;  %v1063_v8 = vsub.f32 %v991_v30, %v2091_v7  ;;  %v1055_v58 = vsub.f32 0.0, %v2091_v7 }
 0xda0   :  { %v1367_v9 = vpop.eup %1366  ;;  %1378 = vpow2.f32 %v1001_v23 }
 0xda1   :  { %v1369_v13 = vpop.eup %1368  ;;  %v2094_v10 = vmul.f32 0.6931472, %v1367_v9  ;;  %v1087_v6 = vmul.f32 %v1079_v57, %v1063_v8 }
 0xda2   :  { %v1081_v15 = vmul.f32 %v1369_v13, %v1357_v40 }
 0xda3   :  { %v1095_v12 = vsel %vm96_vm1, %v1087_v6, 0.0  ;;  %v1065_v14 = vsub.f32 %v993_v28, %v2094_v10  ;;  %v1005_v28 = vmul.f32 1.442695, %v2114_v55 }
 0xda4   :  { %v1371_v16 = vpop.eup %1370  ;;  %1096 = vadd.xlane.f32.xlu0 %v1095_v12 }
 0xda5   :  { %v1373_v17 = vpop.eup %1372  ;;  %v2098_v18 = vmul.f32 0.6931472, %v1371_v16  ;;  %v1089_v19 = vmul.f32 %v1081_v15, %v1065_v14  ;;  %1380 = vpow2.f32 %v1005_v28  ;;  %v1057_v15 = vsub.f32 0.0, %v2094_v10 }
 0xda6   :  { %v1083_v42 = vmul.f32 %v1373_v17, %v1359_v60  ;;  %1382 = vpow2.f32 %v1009_v5 }
 0xda7   :  { %v1101_v20 = vsel %vm96_vm1, %v1089_v19, 0.0  ;;  %v1067_v41 = vsub.f32 %v995_v11, %v2098_v18 }
 0xda8   :  { %v1375_v43 = vpop.eup %1374  ;;  %1102 = vadd.xlane.f32.xlu0 %v1101_v20 }
 0xda9   :  { %v1377_v44 = vpop.eup %1376  ;;  %v2102_v45 = vmul.f32 0.6931472, %v1375_v43  ;;  %v1091_v46 = vmul.f32 %v1083_v42, %v1067_v41 }
 0xdaa   :  { %v1085_v50 = vmul.f32 %v1377_v44, %v1361_v0  ;;  %v1379_v32 = vpop.eup %1378 }
 0xdab   :  { %v1107_v47 = vsel %vm96_vm1, %v1091_v46, 0.0  ;;  %v1069_v48 = vsub.f32 %v997_v36, %v2102_v45  ;;  %v1018_v11 = vsel %vm96_vm1, %v1379_v32, 0.0  ;;  %v1059_v46 = vsub.f32 0.0, %v2098_v18 }
 0xdac   :  { %1108 = vadd.xlane.f32.xlu0 %v1107_v47 }
 0xdad   :  { %v1093_v51 = vmul.f32 %v1085_v50, %v1069_v48 }
 0xdaf   :  { %v1113_v53 = vsel %vm96_vm1, %v1093_v51, 0.0  ;;  %v1381_v1 = vpop.eup %1380 }
 0xdb0   :  { %1114 = vadd.xlane.f32.xlu0 %v1113_v53  ;;  %v1024_v27 = vsel %vm96_vm1, %v1381_v1, 0.0  ;;  %v2128_v33 = vpop.eup %1382 }
 0xdb1   :  { %v1030_v34 = vsel %vm96_vm1, %v2128_v33, 0.0 }
 0xdbe   :  { %v948_v24 = vpop.f32.mrb[16].mxu1 }
 0xdbf   :  { %v954_v25 = vadd.f32 %v1670_v22, %v948_v24  ;;  %v1320_v26 = vpop.f32.mrb[17].mxu1 }
 0xdc0   :  { %v951_v30 = vpop.f32.mrb[18].mxu1 }
 0xdc1   :  { %958 = vst.msk [vmem:[#allocation2 + $0x38] sm:$0xff] %vm96_vm1, %v954_v25  ;;  %v1321_v59 = vpop.f32.mrb[19].mxu1  ;;  %v955_v49 = vsel %vm96_vm1, %v954_v25, -inf  ;;  %v1061_v25 = vsub.f32 0.0, %v2102_v45 }
 0xdc2   :  { %956 = vmax.index.xlane.f32.xlu0 %v955_v49 }
 0xdc8   :  { %v966_v22 = vld [vmem:[#allocation2 + $0x38] sm:$0xff] }
 0xdc9   :  { %v988_v56 = vsel %vm96_vm1, %v966_v22, -inf }
 0xdca   :  { %989 = vmax.xlane.f32.xlu1 %v988_v56 }
 0xdce   :  { %1019 = vadd.xlane.f32.xlu1 %v1018_v11 }
 0xdd2   :  { %1025 = vadd.xlane.f32.xlu1 %v1024_v27 }
 0xdd6   :  { %1031 = vadd.xlane.f32.xlu1 %v1030_v34 }
 0xe31   :  { %v2132_v35 = vpop.xlane.xlu0 %1096 }
 0xe32   :  { %v1119_v27 = vsub.f32 0.0, %v2132_v35 }
 0xe35   :  { %v2134_v36 = vpop.xlane.xlu0 %1102 }
 0xe39   :  { %v2136_v37 = vpop.xlane.xlu0 %1108 }
 0xe3d   :  { %v2138_v38 = vpop.xlane.xlu0 %1114 }
 0xe4f   :  { %v957_v39 = vpop.xlane.xlu0 %956 }
 0xe50   :  { %v1134_v40 = vcvt.s32.f32 %v957_v39 }
 0xe52   :  { %v1148_v60 = vsel %vm1147_vm2, %v2080_v52, %v1134_v40 }
 0xe53   :  { %v1150_v4 = vsel %vm1149_vm14, %v1148_v60, 0.0 }
 0xe54   :  { %v1152_v0 = vsel %vm1151_vm15, %v1150_v4, %v1055_v58  ;;  %v1121_v58 = vsub.f32 0.0, %v2134_v36 }
 0xe57   :  { %v990_v61 = vpop.xlane.xlu1 %989 }
 0xe58   :  { %v2145_v62 = vsub.f32 %v966_v22, %v990_v61 }
 0xe5a   :  { %v1013_v63 = vmul.f32 1.442695, %v2145_v62 }
 0xe5b   :  { %v1020_v2 = vpop.xlane.xlu1 %1019 }
 0xe5c   :  { %1384 = vpow2.f32 %v1013_v63 }
 0xe5d   :  { %1386 = vlog2.f32 %v1020_v2 }
 0xe5e   :  { %1388 = vrcp.f32 %v1020_v2 }
 0xe5f   :  { %v1026_v3 = vpop.xlane.xlu1 %1025 }
 0xe60   :  { %1390 = vlog2.f32 %v1026_v3 }
 0xe61   :  { %1392 = vrcp.f32 %v1026_v3 }
 0xe63   :  { %v1032_v31 = vpop.xlane.xlu1 %1031 }
 0xe64   :  { %1394 = vlog2.f32 %v1032_v31 }
 0xe65   :  { %1396 = vrcp.f32 %v1032_v31  ;;  %v1125_v31 = vsub.f32 0.0, %v2138_v38 }
 0xe66   :  { %v1385_v52 = vpop.eup %1384 }
 0xe67   :  { %v1387_v7 = vpop.eup %1386  ;;  %v1036_v21 = vsel %vm96_vm1, %v1385_v52, 0.0 }
 0xe68   :  { %v1389_v8 = vpop.eup %1388  ;;  %v1042_v57 = vmul.f32 0.6931472, %v1387_v7  ;;  %1037 = vadd.xlane.f32.xlu1 %v1036_v21 }
 0xe69   :  { %v1080_v12 = vmul.f32 %v1389_v8, %v1379_v32 }
 0xe6a   :  { %v1391_v9 = vpop.eup %1390  ;;  %v1056_v13 = vsub.f32 0.0, %v1042_v57  ;;  %v1064_v6 = vsub.f32 %v2109_v54, %v1042_v57 }
 0xe6b   :  { %v1393_v14 = vpop.eup %1392  ;;  %v1046_v16 = vmul.f32 0.6931472, %v1391_v9 }
 0xe6c   :  { %v1088_v17 = vmul.f32 %v1080_v12, %v1064_v6  ;;  %v1154_v19 = vsel %vm1153_vm3, %v1152_v0, %v1056_v13  ;;  %v1082_v42 = vmul.f32 %v1393_v14, %v1381_v1 }
 0xe6d   :  { %v1058_v20 = vsub.f32 0.0, %v1046_v16  ;;  %v1066_v41 = vsub.f32 %v2114_v55, %v1046_v16  ;;  %v1156_v43 = vsel %vm1155_vm4, %v1154_v19, %v1057_v15 }
 0xe6e   :  { %v1395_v44 = vpop.eup %1394  ;;  %v1098_v47 = vsel %vm96_vm1, %v1088_v17, 0.0 }
 0xe6f   :  { %v1397_v48 = vpop.eup %1396  ;;  %v1050_v50 = vmul.f32 0.6931472, %v1395_v44  ;;  %1099 = vadd.xlane.f32.xlu1 %v1098_v47  ;;  %v1090_v10 = vmul.f32 %v1082_v42, %v1066_v41  ;;  %v1158_v51 = vsel %vm1157_vm6, %v1156_v43, %v1058_v20 }
 0xe70   :  { %v1160_v53 = vsel %vm1159_vm7, %v1158_v51, %v1059_v46  ;;  %v1084_v24 = vmul.f32 %v1397_v48, %v2128_v33 }
 0xe71   :  { %v1060_v54 = vsub.f32 0.0, %v1050_v50  ;;  %v1104_v23 = vsel %vm96_vm1, %v1090_v10, 0.0  ;;  %v1068_v55 = vsub.f32 %v2120_v29, %v1050_v50 }
 0xe73   :  { %1105 = vadd.xlane.f32.xlu1 %v1104_v23  ;;  %v1092_v18 = vmul.f32 %v1084_v24, %v1068_v55  ;;  %v1162_v26 = vsel %vm1161_vm8, %v1160_v53, %v1060_v54 }
 0xe74   :  { %v1164_v28 = vsel %vm1163_vm9, %v1162_v26, %v1061_v25 }
 0xe75   :  { %v1110_v30 = vsel %vm96_vm1, %v1092_v18, 0.0 }
 0xe77   :  { %1111 = vadd.xlane.f32.xlu1 %v1110_v30 }
 0xef5   :  { %v1038_v59 = vpop.xlane.xlu1 %1037 }
 0xef6   :  { %1398 = vlog2.f32 %v1038_v59 }
 0xef7   :  { %1400 = vrcp.f32 %v1038_v59 }
 0xefc   :  { %v1100_v33 = vpop.xlane.xlu1 %1099 }
 0xefd   :  { %v1120_v39 = vsub.f32 0.0, %v1100_v33 }
 0xf00   :  { %v1399_v49 = vpop.eup %1398  ;;  %v1106_v60 = vpop.xlane.xlu1 %1105 }
 0xf01   :  { %v1401_v5 = vpop.eup %1400  ;;  %v1054_v22 = vmul.f32 0.6931472, %v1399_v49  ;;  %v1122_v0 = vsub.f32 0.0, %v1106_v60 }
 0xf02   :  { %v1086_v29 = vmul.f32 %v1401_v5, %v1385_v52 }
 0xf03   :  { %v1070_v56 = vsub.f32 %v2145_v62, %v1054_v22  ;;  %v1062_v45 = vsub.f32 0.0, %v1054_v22  ;;  %v1123_v62 = vsub.f32 0.0, %v2136_v37 }
 0xf04   :  { %v1112_v63 = vpop.xlane.xlu1 %1111 }
 0xf05   :  { %v1094_v32 = vmul.f32 %v1086_v29, %v1070_v56  ;;  %v1165_v1 = vsel %vm1135_vm0, %v1062_v45, 0.0  ;;  %v1124_v35 = vsub.f32 0.0, %v1112_v63 }
 0xf06   :  { %v1166_v34 = vsel %vm1137_vm10, %v1165_v1, %v1119_v27 }
 0xf07   :  { %v1116_v11 = vsel %vm96_vm1, %v1094_v32, 0.0  ;;  %v1167_v40 = vsel %vm1139_vm11, %v1166_v34, %v1120_v39 }
 0xf08   :  { %1117 = vadd.xlane.f32.xlu1 %v1116_v11  ;;  %v1168_v4 = vsel %vm1141_vm12, %v1167_v40, %v1121_v58 }
 0xf09   :  { %v1169_v61 = vsel %vm1143_vm13, %v1168_v4, %v1122_v0 }
 0xf0a   :  { %v1170_v2 = vsel %vm1145_vm5, %v1169_v61, %v1123_v62 }
 0xf0b   :  { %v1171_v3 = vsel %vm1147_vm2, %v1170_v2, %v1124_v35 }
 0xf0c   :  { %v1172_v36 = vsel %vm1149_vm14, %v1171_v3, %v1125_v31 }
 0xf95   :  { %v1118_v52 = vpop.xlane.xlu1 %1117 }
 0xf96   :  { %v1126_v7 = vsub.f32 0.0, %v1118_v52 }
 0xf98   :  { %v1173_v21 = vsel %vm1151_vm15, %v1172_v36, %v1126_v7 }
 0xf99   :  { %v1174_v8 = vsel %vm1153_vm3, %v1173_v21, 0.0 }
 0xf9a   :  { %v1175_v57 = vsel %vm1155_vm4, %v1174_v8, 0.0 }
 0xf9b   :  { %1177 = vrot.lane.b32.xlu1 %v1175_v57, %s1531_s3 }
0x100d   :  { %v1178_v37 = vpop.permute.xlu1 %1177 }
0x100e   :  { %v1180_v9 = vsel %vm96_vm1, %v1164_v28, %v1178_v37 }
0x100f   :  { %1181 = vst [vmem:[#allocation11] sm:$0xff] %v1180_v9 }
0x1010   :  { %1501 = shalt.err (!%p1498_p8)
}
0x1011   :  { %s1502_s14 = scalar_lea.hbm %s2198_s7, 128 }
0x1012   :  { %p1503_p9 = scmp.ne.s32.totalorder %s2198_s7, %s1502_s14  ;;  %p1506_p10 = scmp.lt.u32.totalorder %s1502_s14, %s2198_s7 }
0x1014   :  { %p1508_p11 = pnand %p1506_p10, %p1503_p9 }
0x1016   :  { %1511 = shalt.err (!%p1508_p11)
}
0x1017   :  { %1191 = dma.vmem_to_hbm [thread:$0]  %s1189_s11, 128, %s2198_s7, [#allocation5]  }
0x1018   :  { %1518 = dma.done.wait [#allocation5], 128  }
0x1019   :  { %1519 = vsyncadd [#allocation5], 4294967168 }
0x101a   :  { %1195 = vsyncpa [#allocation4], 1 }
0x101b   :  { %1196 = vsyncpa [#allocation7], 1 }
0x101c   :  { %1197 = vsyncpa [#allocation10], 1 }
0x101d   :  { %1198 = vsyncpa [#allocation5], 1 }

</bundles_post_ra>
